<compile_context>
chip_gen: v6e
topology: v6e:2x2x1
jax: 0.10.0
libtpu: 0.0.40
codegen_flags: <defaults>
</compile_context>

<pallas_src>
import functools

import jax
import jax.numpy as jnp
from jax.experimental import pallas as pl
from jax.experimental.pallas import tpu as pltpu

K_IN = 28 * 28 * 1      # 784
K_PAD = 896             # next multiple of 128
HIDDEN = 1024
N_OUT = 10
N_OUT_PAD = 128         # lane-dense output width


def _net_kernel(x_ref, w1_ref, b1_ref, w2_ref, b2_ref, o_ref):
    # Hot path: two MXU matmuls (bf16 in, f32 acc) + bias + ReLU, fused in VMEM.
    h = jnp.dot(x_ref[...], w1_ref[...], preferred_element_type=jnp.float32)
    h = jnp.maximum(h + b1_ref[...], 0.0)          # (TM, 1024) + (1, 1024), ReLU
    # Dropout(p=0.5) -> identity in eval mode.
    y = jnp.dot(h.astype(w2_ref.dtype), w2_ref[...],
                preferred_element_type=jnp.float32)
    o_ref[...] = (y + b2_ref[...]).astype(o_ref.dtype)   # (TM, 128) lane-dense


def prepare_params(w1, b1, w2, b2):
    """One-time param prep: cast to bf16, pad K to 896 and out-features to 128.

    Weights are stored (in_features, out_features) so the kernel computes
    x @ W + b (transposed relative to torch's (out, in) storage).
    """
    w1p = jnp.pad(w1.astype(jnp.bfloat16), ((0, K_PAD - K_IN), (0, 0)))
    w2p = jnp.pad(w2.astype(jnp.bfloat16), ((0, 0), (0, N_OUT_PAD - N_OUT)))
    b1p = b1.reshape(1, HIDDEN).astype(jnp.float32)
    b2p = jnp.pad(b2.reshape(1, N_OUT).astype(jnp.float32),
                  ((0, 0), (0, N_OUT_PAD - N_OUT)))
    return w1p, b1p, w2p, b2p


@functools.partial(jax.jit, static_argnames=("tm",))
def net_forward(x_nchw, w1p, b1p, w2p, b2p, *, tm=256):
    """Run the fused MLP. x_nchw: (N, 1, 28, 28) float32. Returns (N, 10) f32."""
    n = x_nchw.shape[0]

    # Glue: torch .view(-1, 784), cast to bf16, zero-pad K to 896.
    x2d = x_nchw.reshape(n, K_IN).astype(jnp.bfloat16)
    x2d = jnp.pad(x2d, ((0, 0), (0, K_PAD - K_IN)))

    # Row tile: TM for large batches, batch rounded up to a sublane multiple
    # for small ones. Padded rows are zeros and are sliced off at the end.
    tm_eff = tm if n >= tm else max(8, ((n + 7) // 8) * 8)
    n_pad = ((n + tm_eff - 1) // tm_eff) * tm_eff
    if n_pad != n:
        x2d = jnp.pad(x2d, ((0, n_pad - n), (0, 0)))
    n_tiles = n_pad // tm_eff

    flops = 2 * n_pad * (K_PAD * HIDDEN + HIDDEN * N_OUT_PAD)
    bytes_accessed = (x2d.size * 2 + w1p.size * 2 + w2p.size * 2
                      + b1p.size * 4 + b2p.size * 4 + n_pad * N_OUT_PAD * 4)

    out = pl.pallas_call(
        _net_kernel,
        out_shape=jax.ShapeDtypeStruct((n_pad, N_OUT_PAD), jnp.float32),
        grid_spec=pltpu.PrefetchScalarGridSpec(
            num_scalar_prefetch=0,
            grid=(n_tiles,),
            in_specs=[
                pl.BlockSpec((tm_eff, K_PAD), lambda i: (i, 0)),      # x tile
                pl.BlockSpec((K_PAD, HIDDEN), lambda i: (0, 0)),      # W1 resident
                pl.BlockSpec((1, HIDDEN), lambda i: (0, 0)),          # b1 resident
                pl.BlockSpec((HIDDEN, N_OUT_PAD), lambda i: (0, 0)),  # W2 resident
                pl.BlockSpec((1, N_OUT_PAD), lambda i: (0, 0)),       # b2 resident
            ],
            out_specs=pl.BlockSpec((tm_eff, N_OUT_PAD), lambda i: (i, 0)),
        ),
        compiler_params=pltpu.CompilerParams(
            dimension_semantics=("parallel",),   # shards across v7x's 2 TCs
        ),
        cost_estimate=pl.CostEstimate(
            flops=flops, transcendentals=0, bytes_accessed=bytes_accessed),
    )(x2d, w1p, b1p, w2p, b2p)

    return out[:n, :N_OUT]


def init_params(key):
    """Deterministic init; shapes match nn.Linear(784,1024) / nn.Linear(1024,10)."""
    k1, k2, k3, k4 = jax.random.split(key, 4)
    bound1 = 1.0 / jnp.sqrt(784.0)
    bound2 = 1.0 / jnp.sqrt(1024.0)
    w1 = jax.random.uniform(k1, (K_IN, HIDDEN), jnp.float32, -bound1, bound1)
    b1 = jax.random.uniform(k2, (HIDDEN,), jnp.float32, -bound1, bound1)
    w2 = jax.random.uniform(k3, (HIDDEN, N_OUT), jnp.float32, -bound2, bound2)
    b2 = jax.random.uniform(k4, (N_OUT,), jnp.float32, -bound2, bound2)
    return w1, b1, w2, b2


if __name__ == "__main__":
    key = jax.random.PRNGKey(0)
    k_x, k_p = jax.random.split(key)

    # Small batch; input shaped like MNIST NCHW as the module implies.
    batch = 8
    x = jax.random.normal(k_x, (batch, 1, 28, 28), jnp.float32)
    w1, b1, w2, b2 = init_params(k_p)
    w1p, b1p, w2p, b2p = prepare_params(w1, b1, w2, b2)

    out = net_forward(x, w1p, b1p, w2p, b2p)
    out = jax.block_until_ready(out)

    # Sanity check against a pure-JAX f32 reference of the same forward pass.
    # Tolerance relaxed for bf16 weight/activation storage (f32 accumulate).
    x2d = x.reshape(batch, K_IN)
    ref = jnp.maximum(x2d @ w1 + b1, 0.0) @ w2 + b2
    assert out.shape == (batch, N_OUT)
    assert jnp.allclose(out, ref, atol=3e-2, rtol=3e-2)

    print("KERNEL_OK")
</pallas_src>

<mosaic_0001>
module attributes {stable_mosaic.version = 11 : i64} {
  func.func @_net_kernel(%arg0: i32, %arg1: memref<8x896xbf16, #tpu.memory_space<vmem>>, %arg2: memref<896x1024xbf16, #tpu.memory_space<vmem>>, %arg3: memref<1x1024xf32, #tpu.memory_space<vmem>>, %arg4: memref<1024x128xbf16, #tpu.memory_space<vmem>>, %arg5: memref<1x128xf32, #tpu.memory_space<vmem>>, %arg6: memref<8x128xf32, #tpu.memory_space<vmem>>) attributes {dimension_semantics = [#tpu.dimension_semantics<parallel>], iteration_bounds = array<i64: 1>, scalar_prefetch = 0 : i64, scratch_operands = 0 : i64, tpu.core_type = #tpu.core_type<tc>, window_params = [{transform_indices = @transform_0, window_bounds = array<i64: 8, 896>}, {pipeline_mode = #tpu.pipeline_mode<synchronous>, transform_indices = @transform_1, window_bounds = array<i64: 896, 1024>}, {pipeline_mode = #tpu.pipeline_mode<synchronous>, transform_indices = @transform_2, window_bounds = array<i64: 1, 1024>}, {pipeline_mode = #tpu.pipeline_mode<synchronous>, transform_indices = @transform_3, window_bounds = array<i64: 1024, 128>}, {pipeline_mode = #tpu.pipeline_mode<synchronous>, transform_indices = @transform_4, window_bounds = array<i64: 1, 128>}, {transform_indices = @transform_5, window_bounds = array<i64: 8, 128>}]} {
    %c0 = arith.constant 0 : index
    %c0_0 = arith.constant 0 : index
    %0 = vector.load %arg1[%c0, %c0_0] : memref<8x896xbf16, #tpu.memory_space<vmem>>, vector<8x896xbf16>
    %c0_1 = arith.constant 0 : index
    %c0_2 = arith.constant 0 : index
    %1 = vector.load %arg2[%c0_1, %c0_2] : memref<896x1024xbf16, #tpu.memory_space<vmem>>, vector<896x1024xbf16>
    %cst = arith.constant dense<0.000000e+00> : vector<8x1024xf32>
    %2 = tpu.matmul %0, %1, %cst {dimension_numbers = #tpu.dot_dimension_numbers<[1], [0], [0], [1], [0, 0, 1, 1], [], []>} : vector<8x896xbf16>, vector<896x1024xbf16>, vector<8x1024xf32> -> vector<8x1024xf32>
    %c0_3 = arith.constant 0 : index
    %c0_4 = arith.constant 0 : index
    %3 = vector.load %arg3[%c0_3, %c0_4] : memref<1x1024xf32, #tpu.memory_space<vmem>>, vector<1x1024xf32>
    %4 = vector.broadcast %3 : vector<1x1024xf32> to vector<8x1024xf32>
    %5 = arith.addf %2, %4 : vector<8x1024xf32>
    %cst_5 = arith.constant 0.000000e+00 : f32
    %6 = vector.broadcast %cst_5 : f32 to vector<8x1024xf32>
    %7 = arith.maximumf %5, %6 : vector<8x1024xf32>
    %8 = arith.truncf %7 : vector<8x1024xf32> to vector<8x1024xbf16>
    %c0_6 = arith.constant 0 : index
    %c0_7 = arith.constant 0 : index
    %9 = vector.load %arg4[%c0_6, %c0_7] : memref<1024x128xbf16, #tpu.memory_space<vmem>>, vector<1024x128xbf16>
    %cst_8 = arith.constant dense<0.000000e+00> : vector<8x128xf32>
    %10 = tpu.matmul %8, %9, %cst_8 {dimension_numbers = #tpu.dot_dimension_numbers<[1], [0], [0], [1], [0, 0, 1, 1], [], []>} : vector<8x1024xbf16>, vector<1024x128xbf16>, vector<8x128xf32> -> vector<8x128xf32>
    %c0_9 = arith.constant 0 : index
    %c0_10 = arith.constant 0 : index
    %11 = vector.load %arg5[%c0_9, %c0_10] : memref<1x128xf32, #tpu.memory_space<vmem>>, vector<1x128xf32>
    %12 = vector.broadcast %11 : vector<1x128xf32> to vector<8x128xf32>
    %13 = arith.addf %10, %12 : vector<8x128xf32>
    %c0_11 = arith.constant 0 : index
    %c0_12 = arith.constant 0 : index
    %14 = vector.load %arg6[%c0_11, %c0_12] : memref<8x128xf32, #tpu.memory_space<vmem>>, vector<8x128xf32>
    tpu.vector_store %arg6[%c0_11, %c0_12], %13 {strides = array<i32>} : memref<8x128xf32, #tpu.memory_space<vmem>>, vector<8x128xf32>,
    return
  }
  func.func @transform_0(%arg0: i32) -> (i32, i32) {
    %c0_i32 = arith.constant 0 : i32
    %c0_i32_0 = arith.constant 0 : i32
    return %arg0, %c0_i32 : i32, i32
  }
  func.func @transform_1(%arg0: i32) -> (i32, i32) {
    %c0_i32 = arith.constant 0 : i32
    %c0_i32_0 = arith.constant 0 : i32
    %c0_i32_1 = arith.constant 0 : i32
    return %c0_i32, %c0_i32_0 : i32, i32
  }
  func.func @transform_2(%arg0: i32) -> (i32, i32) {
    %c0_i32 = arith.constant 0 : i32
    %c0_i32_0 = arith.constant 0 : i32
    %c0_i32_1 = arith.constant 0 : i32
    return %c0_i32, %c0_i32_0 : i32, i32
  }
  func.func @transform_3(%arg0: i32) -> (i32, i32) {
    %c0_i32 = arith.constant 0 : i32
    %c0_i32_0 = arith.constant 0 : i32
    %c0_i32_1 = arith.constant 0 : i32
    return %c0_i32, %c0_i32_0 : i32, i32
  }
  func.func @transform_4(%arg0: i32) -> (i32, i32) {
    %c0_i32 = arith.constant 0 : i32
    %c0_i32_0 = arith.constant 0 : i32
    %c0_i32_1 = arith.constant 0 : i32
    return %c0_i32, %c0_i32_0 : i32, i32
  }
  func.func @transform_5(%arg0: i32) -> (i32, i32) {
    %c0_i32 = arith.constant 0 : i32
    %c0_i32_0 = arith.constant 0 : i32
    return %arg0, %c0_i32 : i32, i32
  }
}

</mosaic_0001>

<bundles_post_ra>
// kernel: net_forward.1
= control target key start
LH: loop header
LB: loop body
LE: loop exit
PB: predicated region body
PF: predicated region fallthrough
CT: control target
= control target key end

     0   :  { %10 = vsyncpa [#allocation3], 0  ;;  %s5212_s0 = inlined_call_operand.vmem [shape: bf16[8,896], index: 0, kind: input, shape index: {}]   ;;  %s5213_s1 = inlined_call_operand.hbm [shape: bf16[896,1024], index: 1, kind: input, shape index: {}]   ;;  %s5214_s2 = inlined_call_operand.hbm [shape: f32[1,1024], index: 2, kind: input, shape index: {}]   ;;  %s5215_s3 = inlined_call_operand.hbm [shape: bf16[1024,128], index: 3, kind: input, shape index: {}]   ;;  %s5216_s4 = inlined_call_operand.hbm [shape: f32[1,128], index: 4, kind: input, shape index: {}]   ;;  %s5217_s5 = inlined_call_operand.hbm [shape: f32[8,128], index: 5, kind: output, shape index: {}]  }
   0x1   :  { %11 = vsyncpa [#allocation6], 0 }
   0x2   :  { %12 = vsyncpa [#allocation9], 0 }
   0x3   :  { %13 = vsyncpa [#allocation4], 0  ;;  %s5000_s18 = smov [#allocation5]   ;;  %s5001_s20 = smov [#allocation2]  }
   0x4   :  { %s34_s19 = sshll.u32 %s5000_s18, 4  ;;  %s21_s21 = sshll.u32 %s5001_s20, 4  ;;  %s35_s19 = int_to_ptr.vmem [resolvable:$true] %s34_s19  ;;  %s22_s21 = int_to_ptr.vmem [resolvable:$true] %s21_s21 }
   0x5   :  { %s4900_s22 = scalar_lea.vmem %s35_s19, 128  ;;  %p4905_p1 = scmp.lt.s32.totalorder %s35_s19, %s35_s19 }
   0x6   :  { %p4901_p0 = scmp.ne.s32.totalorder %s35_s19, %s4900_s22  ;;  %p4906_p2 = scmp.lt.s32.totalorder %s4900_s22, %s4900_s22 }
   0x8   :  { %p4907_p3 = por %p4906_p2, %p4905_p1 }
   0xa   :  { %p4908_p4 = pnand %p4907_p3, %p4901_p0 }
   0xc   :  { %4911 = shalt.err (!%p4908_p4)
}
   0xd   :  { %37 = dma.hbm_to_vmem [thread:$0]  %s5214_s2, 128, %s35_s19, [#allocation6]  }
   0xe   :  { %s4920_s25 = scalar_lea.vmem %s22_s21, 57344  ;;  %p4925_p6 = scmp.lt.s32.totalorder %s22_s21, %s22_s21 }
   0xf   :  { %p4921_p5 = scmp.ne.s32.totalorder %s22_s21, %s4920_s25  ;;  %p4926_p7 = scmp.lt.s32.totalorder %s4920_s25, %s4920_s25 }
  0x11   :  { %p4927_p8 = por %p4926_p7, %p4925_p6 }
  0x13   :  { %p4928_p9 = pnand %p4927_p8, %p4921_p5 }
  0x15   :  { %4931 = shalt.err (!%p4928_p9)
}
  0x16   :  { %s5002_s26 = smov 512   ;;  %s5003_s27 = smov 32  }
  0x17   :  { %27 = dma.hbm_to_vmem [thread:$0]  %s5213_s1, 57344, %s22_s21, [#allocation3], %s5002_s26, %s5002_s26, %s5003_s27  }
  0x18   :  { %s5004_s30 = smov [#allocation7]  }
  0x19   :  { %s43_s6 = sshll.u32 %s5004_s30, 4  ;;  %s44_s6 = int_to_ptr.vmem [resolvable:$true] %s43_s6 }
  0x1a   :  { %s4940_s7 = scalar_lea.vmem %s44_s6, 8192  ;;  %p4945_p11 = scmp.lt.s32.totalorder %s44_s6, %s44_s6 }
  0x1b   :  { %p4941_p10 = scmp.ne.s32.totalorder %s44_s6, %s4940_s7  ;;  %p4946_p12 = scmp.lt.s32.totalorder %s4940_s7, %s4940_s7 }
  0x1d   :  { %p4947_p13 = por %p4946_p12, %p4945_p11 }
  0x1f   :  { %p4948_p0 = pnand %p4947_p13, %p4941_p10 }
  0x21   :  { %4951 = shalt.err (!%p4948_p0)
}
  0x22   :  { %s5005_s2 = smov 64   ;;  %s5006_s8 = smov 4  }
  0x23   :  { %49 = dma.hbm_to_vmem [thread:$0]  %s5215_s3, 8192, %s44_s6, [#allocation6], %s5005_s2, %s5005_s2, %s5006_s8  }
  0x24   :  { %s5007_s11 = smov [#allocation8]  }
  0x25   :  { %s56_s12 = sshll.u32 %s5007_s11, 4  ;;  %s57_s12 = int_to_ptr.vmem [resolvable:$true] %s56_s12 }
  0x26   :  { %s4960_s1 = scalar_lea.vmem %s57_s12, 16  ;;  %s4964_s13 = scalar_lea.vmem %s57_s12, 32 }
  0x27   :  { %p4961_p1 = scmp.ne.s32.totalorder %s57_s12, %s4960_s1  ;;  %p4965_p2 = scmp.lt.s32.totalorder %s57_s12, %s57_s12 }
  0x28   :  { %p4966_p3 = scmp.lt.s32.totalorder %s4964_s13, %s4960_s1 }
  0x2a   :  { %p4967_p4 = por %p4966_p3, %p4965_p2 }
  0x2c   :  { %p4968_p5 = pnand %p4967_p4, %p4961_p1 }
  0x2e   :  { %4971 = shalt.err (!%p4968_p5)
}
  0x2f   :  { %59 = dma.hbm_to_vmem [thread:$0]  %s5216_s4, 16, %s57_s12, [#allocation9]  }
  0x30   :  { %4992 = dma.done.wait [#allocation3], 57344  }
  0x31   :  { %4993 = vsyncadd [#allocation3], 4294909952 }
  0x32   :  { %4994 = dma.done.wait [#allocation6], 8320  }
  0x33   :  { %4995 = vsyncadd [#allocation6], 4294958976 }
  0x34   :  { %4996 = dma.done.wait [#allocation9], 16  }
  0x35   :  { %4997 = vsyncadd [#allocation9], 4294967280  ;;  %v133_v0 = vld [vmem:[#allocation2 + $0x1c0] sm:$0xff]  ;;  %v5060_v54 = vld [vmem:[%s5212_s0 + $0x8] sm:$0xff] }
  0x36   :  { %v137_v1 = vld [vmem:[#allocation2 + $0x1e0] sm:$0xff]  ;;  %v5068_v59 = vcombine.high %v5060_v54, %v5060_v54 }
  0x37   :  { %v261_v2 = vld [vmem:[#allocation2 + $0x5c0] sm:$0xff]  ;;  %v4265_v3 = vcombine.high %v133_v0, %v137_v1  ;;  %v4264_v5 = vcombine.low %v133_v0, %v137_v1 }
  0x38   :  { %v265_v4 = vld [vmem:[#allocation2 + $0x5e0] sm:$0xff]  ;;  %2905 = vmatprep.mubr.bf16.mxu1 %v5068_v59 }
  0x39   :  { %v125_v6 = vld [vmem:[#allocation2 + $0x180] sm:$0xff]  ;;  %v4393_v8 = vcombine.high %v261_v2, %v265_v4  ;;  %v4392_v9 = vcombine.low %v261_v2, %v265_v4  ;;  %2832 = vmatprep.subr.bf16.mxu0 %v4265_v3 }
  0x3a   :  { %v129_v7 = vld [vmem:[#allocation2 + $0x1a0] sm:$0xff]  ;;  %2833 = vmatpush1.bf16.msra.mxu0 %v4264_v5 }
  0x3b   :  { %v4257_v10 = vcombine.high %v125_v6, %v129_v7  ;;  %v253_v11 = vld [vmem:[#allocation2 + $0x580] sm:$0xff]  ;;  %2873 = vmatprep.subr.bf16.mxu1 %v4393_v8  ;;  %v4256_v18 = vcombine.low %v125_v6, %v129_v7 }
  0x3c   :  { %v257_v12 = vld [vmem:[#allocation2 + $0x5a0] sm:$0xff]  ;;  %2874 = vmatpush1.bf16.msra.mxu1 %v4392_v9 }
  0x3d   :  { %v117_v13 = vld [vmem:[#allocation2 + $0x140] sm:$0xff]  ;;  %v4385_v14 = vcombine.high %v253_v11, %v257_v12  ;;  %2834 = vmatprep.subr.bf16.mxu0 %v4257_v10  ;;  %v4384_v19 = vcombine.low %v253_v11, %v257_v12 }
  0x3e   :  { %v121_v15 = vld [vmem:[#allocation2 + $0x160] sm:$0xff]  ;;  %2835 = vmatpush1.bf16.msra.mxu0 %v4256_v18 }
  0x3f   :  { %v245_v16 = vld [vmem:[#allocation2 + $0x540] sm:$0xff]  ;;  %v4249_v20 = vcombine.high %v117_v13, %v121_v15  ;;  %2875 = vmatprep.subr.bf16.mxu1 %v4385_v14  ;;  %v4248_v26 = vcombine.low %v117_v13, %v121_v15 }
  0x40   :  { %v249_v17 = vld [vmem:[#allocation2 + $0x560] sm:$0xff]  ;;  %2876 = vmatpush1.bf16.msra.mxu1 %v4384_v19 }
  0x41   :  { %v4377_v21 = vcombine.high %v245_v16, %v249_v17  ;;  %v109_v22 = vld [vmem:[#allocation2 + $0x100] sm:$0xff]  ;;  %2836 = vmatprep.subr.bf16.mxu0 %v4249_v20  ;;  %v4376_v27 = vcombine.low %v245_v16, %v249_v17 }
  0x42   :  { %v113_v23 = vld [vmem:[#allocation2 + $0x120] sm:$0xff]  ;;  %2837 = vmatpush1.bf16.msra.mxu0 %v4248_v26 }
  0x43   :  { %v237_v24 = vld [vmem:[#allocation2 + $0x500] sm:$0xff]  ;;  %v4241_v28 = vcombine.high %v109_v22, %v113_v23  ;;  %2877 = vmatprep.subr.bf16.mxu1 %v4377_v21  ;;  %v4240_v34 = vcombine.low %v109_v22, %v113_v23 }
  0x44   :  { %v241_v25 = vld [vmem:[#allocation2 + $0x520] sm:$0xff]  ;;  %2878 = vmatpush1.bf16.msra.mxu1 %v4376_v27 }
  0x45   :  { %v4369_v29 = vcombine.high %v237_v24, %v241_v25  ;;  %v101_v30 = vld [vmem:[#allocation2 + $0xc0] sm:$0xff]  ;;  %2838 = vmatprep.subr.bf16.mxu0 %v4241_v28  ;;  %v4368_v35 = vcombine.low %v237_v24, %v241_v25 }
  0x46   :  { %v105_v31 = vld [vmem:[#allocation2 + $0xe0] sm:$0xff]  ;;  %2839 = vmatpush1.bf16.msra.mxu0 %v4240_v34 }
  0x47   :  { %v229_v32 = vld [vmem:[#allocation2 + $0x4c0] sm:$0xff]  ;;  %v4233_v36 = vcombine.high %v101_v30, %v105_v31  ;;  %2879 = vmatprep.subr.bf16.mxu1 %v4369_v29  ;;  %v4232_v42 = vcombine.low %v101_v30, %v105_v31 }
  0x48   :  { %v233_v33 = vld [vmem:[#allocation2 + $0x4e0] sm:$0xff]  ;;  %2880 = vmatpush1.bf16.msra.mxu1 %v4368_v35 }
  0x49   :  { %v4361_v37 = vcombine.high %v229_v32, %v233_v33  ;;  %v93_v38 = vld [vmem:[#allocation2 + $0x80] sm:$0xff]  ;;  %2840 = vmatprep.subr.bf16.mxu0 %v4233_v36  ;;  %v4360_v43 = vcombine.low %v229_v32, %v233_v33 }
  0x4a   :  { %v97_v39 = vld [vmem:[#allocation2 + $0xa0] sm:$0xff]  ;;  %2841 = vmatpush1.bf16.msra.mxu0 %v4232_v42 }
  0x4b   :  { %v221_v40 = vld [vmem:[#allocation2 + $0x480] sm:$0xff]  ;;  %v4225_v44 = vcombine.high %v93_v38, %v97_v39  ;;  %2881 = vmatprep.subr.bf16.mxu1 %v4361_v37  ;;  %v4224_v50 = vcombine.low %v93_v38, %v97_v39 }
  0x4c   :  { %v225_v41 = vld [vmem:[#allocation2 + $0x4a0] sm:$0xff]  ;;  %2882 = vmatpush1.bf16.msra.mxu1 %v4360_v43 }
  0x4d   :  { %v4353_v45 = vcombine.high %v221_v40, %v225_v41  ;;  %v85_v46 = vld [vmem:[#allocation2 + $0x40] sm:$0xff]  ;;  %2842 = vmatprep.subr.bf16.mxu0 %v4225_v44  ;;  %v4352_v51 = vcombine.low %v221_v40, %v225_v41 }
  0x4e   :  { %v89_v47 = vld [vmem:[#allocation2 + $0x60] sm:$0xff]  ;;  %2843 = vmatpush1.bf16.msra.mxu0 %v4224_v50 }
  0x4f   :  { %v213_v48 = vld [vmem:[#allocation2 + $0x440] sm:$0xff]  ;;  %v4217_v52 = vcombine.high %v85_v46, %v89_v47  ;;  %2883 = vmatprep.subr.bf16.mxu1 %v4353_v45  ;;  %v4216_v62 = vcombine.low %v85_v46, %v89_v47 }
  0x50   :  { %v217_v49 = vld [vmem:[#allocation2 + $0x460] sm:$0xff]  ;;  %2884 = vmatpush1.bf16.msra.mxu1 %v4352_v51 }
  0x51   :  { %v5055_v53 = vld [vmem:[%s5212_s0] sm:$0xff]  ;;  %v4345_v55 = vcombine.high %v213_v48, %v217_v49  ;;  %2844 = vmatprep.subr.bf16.mxu0 %v4217_v52  ;;  %v4344_v63 = vcombine.low %v213_v48, %v217_v49 }
  0x52   :  { %v77_v56 = vld [vmem:[#allocation2] sm:$0xff]  ;;  %v5064_v58 = vcombine.high %v5055_v53, %v5055_v53  ;;  %2845 = vmatpush1.bf16.msra.mxu0 %v4216_v62 }
  0x53   :  { %v81_v57 = vld [vmem:[#allocation2 + $0x20] sm:$0xff]  ;;  %2885 = vmatprep.subr.bf16.mxu1 %v4345_v55 }
  0x54   :  { %v205_v60 = vld [vmem:[#allocation2 + $0x400] sm:$0xff]  ;;  %2864 = vmatprep.mubr.bf16.mxu0 %v5064_v58  ;;  %v4209_v0 = vcombine.high %v77_v56, %v81_v57  ;;  %v4208_v6 = vcombine.low %v77_v56, %v81_v57  ;;  %2886 = vmatpush1.bf16.msra.mxu1 %v4344_v63 }
  0x55   :  { %v209_v61 = vld [vmem:[#allocation2 + $0x420] sm:$0xff] }
  0x56   :  { %v4337_v1 = vcombine.high %v205_v60, %v209_v61  ;;  %v197_v2 = vld [vmem:[#allocation2 + $0x3c0] sm:$0xff]  ;;  %2846 = vmatprep.subr.bf16.mxu0 %v4209_v0  ;;  %v4336_v7 = vcombine.low %v205_v60, %v209_v61 }
  0x57   :  { %v201_v3 = vld [vmem:[#allocation2 + $0x3e0] sm:$0xff]  ;;  %2847 = vmatpush1.bf16.msra.mxu0 %v4208_v6 }
  0x58   :  { %v325_v4 = vld [vmem:[#allocation2 + $0x7c0] sm:$0xff]  ;;  %v4329_v8 = vcombine.high %v197_v2, %v201_v3  ;;  %2887 = vmatprep.subr.bf16.mxu1 %v4337_v1  ;;  %v4328_v14 = vcombine.low %v197_v2, %v201_v3 }
  0x59   :  { %v329_v5 = vld [vmem:[#allocation2 + $0x7e0] sm:$0xff]  ;;  %2888 = vmatpush1.bf16.msra.mxu1 %v4336_v7 }
  0x5a   :  { %v4457_v9 = vcombine.high %v325_v4, %v329_v5  ;;  %v189_v10 = vld [vmem:[#allocation2 + $0x380] sm:$0xff]  ;;  %2848 = vmatprep.subr.bf16.mxu0 %v4329_v8  ;;  %v4456_v15 = vcombine.low %v325_v4, %v329_v5 }
  0x5b   :  { %v193_v11 = vld [vmem:[#allocation2 + $0x3a0] sm:$0xff]  ;;  %2849 = vmatpush2.bf16.msra.mxu0 %v4328_v14 }
  0x5c   :  { %v317_v12 = vld [vmem:[#allocation2 + $0x780] sm:$0xff]  ;;  %v4321_v16 = vcombine.high %v189_v10, %v193_v11  ;;  %2889 = vmatprep.subr.bf16.mxu1 %v4457_v9  ;;  %v4320_v22 = vcombine.low %v189_v10, %v193_v11 }
  0x5d   :  { %v321_v13 = vld [vmem:[#allocation2 + $0x7a0] sm:$0xff]  ;;  %2890 = vmatpush2.bf16.msra.mxu1 %v4456_v15 }
  0x5e   :  { %v4449_v17 = vcombine.high %v317_v12, %v321_v13  ;;  %v181_v18 = vld [vmem:[#allocation2 + $0x340] sm:$0xff]  ;;  %2850 = vmatprep.subr.bf16.mxu0 %v4321_v16  ;;  %v4448_v23 = vcombine.low %v317_v12, %v321_v13  ;;  %v5074_v16 = vcombine.low %v5055_v53, %v5055_v53 }
  0x5f   :  { %v185_v19 = vld [vmem:[#allocation2 + $0x360] sm:$0xff]  ;;  %2851 = vmatpush2.bf16.msra.mxu0 %v4320_v22 }
  0x60   :  { %v309_v20 = vld [vmem:[#allocation2 + $0x740] sm:$0xff]  ;;  %v4313_v24 = vcombine.high %v181_v18, %v185_v19  ;;  %2891 = vmatprep.subr.bf16.mxu1 %v4449_v17  ;;  %v4312_v30 = vcombine.low %v181_v18, %v185_v19  ;;  %v5078_v19 = vcombine.low %v5060_v54, %v5060_v54 }
  0x61   :  { %v313_v21 = vld [vmem:[#allocation2 + $0x760] sm:$0xff]  ;;  %2892 = vmatpush2.bf16.msra.mxu1 %v4448_v23 }
  0x62   :  { %v4441_v25 = vcombine.high %v309_v20, %v313_v21  ;;  %v173_v26 = vld [vmem:[#allocation2 + $0x300] sm:$0xff]  ;;  %2852 = vmatprep.subr.bf16.mxu0 %v4313_v24  ;;  %v4440_v31 = vcombine.low %v309_v20, %v313_v21  ;;  %v5083_v21 = vld [vmem:[%s5212_s0 + $0x10] sm:$0xff] }
  0x63   :  { %v177_v27 = vld [vmem:[#allocation2 + $0x320] sm:$0xff]  ;;  %2853 = vmatpush2.bf16.msra.mxu0 %v4312_v30  ;;  %v5088_v54 = vcombine.high %v5083_v21, %v5083_v21 }
  0x64   :  { %v301_v28 = vld [vmem:[#allocation2 + $0x700] sm:$0xff]  ;;  %v4305_v32 = vcombine.high %v173_v26, %v177_v27  ;;  %2893 = vmatprep.subr.bf16.mxu1 %v4441_v25  ;;  %v4304_v38 = vcombine.low %v173_v26, %v177_v27 }
  0x65   :  { %v305_v29 = vld [vmem:[#allocation2 + $0x720] sm:$0xff]  ;;  %2894 = vmatpush2.bf16.msra.mxu1 %v4440_v31 }
  0x66   :  { %v4433_v33 = vcombine.high %v301_v28, %v305_v29  ;;  %v165_v34 = vld [vmem:[#allocation2 + $0x2c0] sm:$0xff]  ;;  %2854 = vmatprep.subr.bf16.mxu0 %v4305_v32  ;;  %v4432_v39 = vcombine.low %v301_v28, %v305_v29 }
  0x67   :  { %v169_v35 = vld [vmem:[#allocation2 + $0x2e0] sm:$0xff]  ;;  %2855 = vmatpush2.bf16.msra.mxu0 %v4304_v38 }
  0x68   :  { %v293_v36 = vld [vmem:[#allocation2 + $0x6c0] sm:$0xff]  ;;  %v4297_v40 = vcombine.high %v165_v34, %v169_v35  ;;  %2895 = vmatprep.subr.bf16.mxu1 %v4433_v33  ;;  %v4296_v46 = vcombine.low %v165_v34, %v169_v35 }
  0x69   :  { %v297_v37 = vld [vmem:[#allocation2 + $0x6e0] sm:$0xff]  ;;  %2896 = vmatpush2.bf16.msra.mxu1 %v4432_v39 }
  0x6a   :  { %v4425_v41 = vcombine.high %v293_v36, %v297_v37  ;;  %v157_v42 = vld [vmem:[#allocation2 + $0x280] sm:$0xff]  ;;  %2856 = vmatprep.subr.bf16.mxu0 %v4297_v40  ;;  %v4424_v47 = vcombine.low %v293_v36, %v297_v37  ;;  %v5008_v36 = vmov 0  }
  0x6b   :  { %v161_v43 = vld [vmem:[#allocation2 + $0x2a0] sm:$0xff]  ;;  %2857 = vmatpush2.bf16.msra.mxu0 %v4296_v46 }
  0x6c   :  { %v285_v44 = vld [vmem:[#allocation2 + $0x680] sm:$0xff]  ;;  %v4289_v48 = vcombine.high %v157_v42, %v161_v43  ;;  %2897 = vmatprep.subr.bf16.mxu1 %v4425_v41  ;;  %v4288_v56 = vcombine.low %v157_v42, %v161_v43 }
  0x6d   :  { %v289_v45 = vld [vmem:[#allocation2 + $0x6a0] sm:$0xff]  ;;  %2898 = vmatpush2.bf16.msra.mxu1 %v4424_v47 }
  0x6e   :  { %v4417_v49 = vcombine.high %v285_v44, %v289_v45  ;;  %v149_v50 = vld [vmem:[#allocation2 + $0x240] sm:$0xff]  ;;  %2858 = vmatprep.subr.bf16.mxu0 %v4289_v48  ;;  %v4416_v57 = vcombine.low %v285_v44, %v289_v45 }
  0x6f   :  { %v153_v51 = vld [vmem:[#allocation2 + $0x260] sm:$0xff]  ;;  %2859 = vmatpush2.bf16.msra.mxu0 %v4288_v56 }
  0x70   :  { %v277_v52 = vld [vmem:[#allocation2 + $0x640] sm:$0xff]  ;;  %v4281_v60 = vcombine.high %v149_v50, %v153_v51  ;;  %2899 = vmatprep.subr.bf16.mxu1 %v4417_v49  ;;  %v4280_v2 = vcombine.low %v149_v50, %v153_v51 }
  0x71   :  { %v281_v55 = vld [vmem:[#allocation2 + $0x660] sm:$0xff]  ;;  %2900 = vmatpush2.bf16.msra.mxu1 %v4416_v57 }
  0x72   :  { %v4409_v61 = vcombine.high %v277_v52, %v281_v55  ;;  %v141_v62 = vld [vmem:[#allocation2 + $0x200] sm:$0xff]  ;;  %2860 = vmatprep.subr.bf16.mxu0 %v4281_v60  ;;  %v4408_v3 = vcombine.low %v277_v52, %v281_v55 }
  0x73   :  { %v145_v63 = vld [vmem:[#allocation2 + $0x220] sm:$0xff]  ;;  %2861 = vmatpush2.bf16.msra.mxu0 %v4280_v2 }
  0x74   :  { %v269_v0 = vld [vmem:[#allocation2 + $0x600] sm:$0xff]  ;;  %v4273_v4 = vcombine.high %v141_v62, %v145_v63  ;;  %2901 = vmatprep.subr.bf16.mxu1 %v4409_v61  ;;  %v4272_v10 = vcombine.low %v141_v62, %v145_v63 }
  0x75   :  { %v273_v1 = vld [vmem:[#allocation2 + $0x620] sm:$0xff]  ;;  %2902 = vmatpush2.bf16.msra.mxu1 %v4408_v3 }
  0x76   :  { %v4401_v5 = vcombine.high %v269_v0, %v273_v1  ;;  %v389_v6 = vld [vmem:[#allocation2 + $0x9c0] sm:$0xff]  ;;  %2862 = vmatprep.subr.bf16.mxu0 %v4273_v4  ;;  %v4400_v11 = vcombine.low %v269_v0, %v273_v1 }
  0x77   :  { %v393_v7 = vld [vmem:[#allocation2 + $0x9e0] sm:$0xff]  ;;  %2863 = vmatpush2.bf16.msra.mxu0 %v4272_v10 }
  0x78   :  { %v517_v8 = vld [vmem:[#allocation2 + $0xdc0] sm:$0xff]  ;;  %v4521_v12 = vcombine.high %v389_v6, %v393_v7  ;;  %2903 = vmatprep.subr.bf16.mxu1 %v4401_v5  ;;  %v4520_v20 = vcombine.low %v389_v6, %v393_v7 }
  0x79   :  { %v521_v9 = vld [vmem:[#allocation2 + $0xde0] sm:$0xff]  ;;  %2904 = vmatpush2.bf16.msra.mxu1 %v4400_v11 }
  0x7a   :  { %v4649_v13 = vcombine.high %v517_v8, %v521_v9  ;;  %v381_v14 = vld [vmem:[#allocation2 + $0x980] sm:$0xff]  ;;  %2914 = vmatprep.subr.bf16.mxu0 %v4521_v12  ;;  %v4648_v22 = vcombine.low %v517_v8, %v521_v9  ;;  %2865 = vmatmul.mubr.bf16.vlgmr.msra.gmra.mxu0 %v5074_v16 }
  0x7b   :  { %v385_v15 = vld [vmem:[#allocation2 + $0x9a0] sm:$0xff]  ;;  %2915 = vmatpush1.bf16.msra.mxu0 %v4520_v20  ;;  %2946 = vmatprep.mubr.bf16.mxu0 %v5088_v54 }
  0x7c   :  { %v509_v17 = vld [vmem:[#allocation2 + $0xd80] sm:$0xff]  ;;  %v4513_v23 = vcombine.high %v381_v14, %v385_v15  ;;  %2955 = vmatprep.subr.bf16.mxu1 %v4649_v13  ;;  %2906 = vmatmul.mubr.bf16.vlgmr.msra.gmra.mxu1 %v5078_v19  ;;  %v4512_v28 = vcombine.low %v381_v14, %v385_v15  ;;  %v134_v14 = vld [vmem:[#allocation2 + $0x1c8] sm:$0xff] }
  0x7d   :  { %v513_v18 = vld [vmem:[#allocation2 + $0xda0] sm:$0xff]  ;;  %2956 = vmatpush1.bf16.msra.mxu1 %v4648_v22  ;;  %2987 = vmatprep.mubr.bf16.mxu1 %v5008_v36 }
  0x7e   :  { %v373_v24 = vld [vmem:[#allocation2 + $0x940] sm:$0xff]  ;;  %v4641_v53 = vcombine.high %v509_v17, %v513_v18  ;;  %2916 = vmatprep.subr.bf16.mxu0 %v4513_v23  ;;  %v4640_v29 = vcombine.low %v509_v17, %v513_v18  ;;  %v138_v17 = vld [vmem:[#allocation2 + $0x1e8] sm:$0xff] }
  0x7f   :  { %v377_v25 = vld [vmem:[#allocation2 + $0x960] sm:$0xff]  ;;  %2917 = vmatpush1.bf16.msra.mxu0 %v4512_v28 }
  0x80   :  { %v501_v26 = vld [vmem:[#allocation2 + $0xd40] sm:$0xff]  ;;  %v4505_v30 = vcombine.high %v373_v24, %v377_v25  ;;  %2957 = vmatprep.subr.bf16.mxu1 %v4641_v53  ;;  %v4504_v37 = vcombine.low %v373_v24, %v377_v25  ;;  %v126_v53 = vld [vmem:[#allocation2 + $0x188] sm:$0xff]  ;;  %v5096_v25 = vld [vmem:[%s5212_s0 + $0x18] ss:$0 sps:$4 sm:$0xff]  }
  0x81   :  { %v505_v27 = vld [vmem:[#allocation2 + $0xd60] sm:$0xff]  ;;  %2958 = vmatpush1.bf16.msra.mxu1 %v4640_v29  ;;  %v4266_v29 = vcombine.low %v134_v14, %v138_v17 }
  0x82   :  { %v365_v31 = vld [vmem:[#allocation2 + $0x900] sm:$0xff]  ;;  %v4633_v34 = vcombine.high %v501_v26, %v505_v27  ;;  %2918 = vmatprep.subr.bf16.mxu0 %v4505_v30  ;;  %v4632_v38 = vcombine.low %v501_v26, %v505_v27  ;;  %v4267_v26 = vcombine.high %v134_v14, %v138_v17  ;;  %v130_v27 = vld [vmem:[#allocation2 + $0x1a8] sm:$0xff] }
  0x83   :  { %v369_v32 = vld [vmem:[#allocation2 + $0x920] sm:$0xff]  ;;  %2919 = vmatpush1.bf16.msra.mxu0 %v4504_v37  ;;  %v78_v14 = vld [vmem:[#allocation2 + $0x8] sm:$0xff] }
  0x84   :  { %v493_v33 = vld [vmem:[#allocation2 + $0xd00] sm:$0xff]  ;;  %v4497_v39 = vcombine.high %v365_v31, %v369_v32  ;;  %2959 = vmatprep.subr.bf16.mxu1 %v4633_v34  ;;  %v4496_v45 = vcombine.low %v365_v31, %v369_v32  ;;  %v4259_v34 = vcombine.high %v126_v53, %v130_v27  ;;  %v82_v17 = vld [vmem:[#allocation2 + $0x28] sm:$0xff] }
  0x85   :  { %v497_v35 = vld [vmem:[#allocation2 + $0xd20] sm:$0xff]  ;;  %2960 = vmatpush1.bf16.msra.mxu1 %v4632_v38  ;;  %v4258_v38 = vcombine.low %v126_v53, %v130_v27  ;;  %v262_v53 = vld [vmem:[#allocation2 + $0x5c8] sm:$0xff] }
  0x86   :  { %v357_v40 = vld [vmem:[#allocation2 + $0x8c0] sm:$0xff]  ;;  %v4625_v43 = vcombine.high %v493_v33, %v497_v35  ;;  %2920 = vmatprep.subr.bf16.mxu0 %v4497_v39  ;;  %v4624_v46 = vcombine.low %v493_v33, %v497_v35  ;;  %v118_v33 = vld [vmem:[#allocation2 + $0x148] sm:$0xff] }
  0x87   :  { %v361_v41 = vld [vmem:[#allocation2 + $0x8e0] sm:$0xff]  ;;  %2921 = vmatpush1.bf16.msra.mxu0 %v4496_v45  ;;  %v122_v35 = vld [vmem:[#allocation2 + $0x168] sm:$0xff] }
  0x88   :  { %v485_v42 = vld [vmem:[#allocation2 + $0xcc0] sm:$0xff]  ;;  %v4489_v47 = vcombine.high %v357_v40, %v361_v41  ;;  %2961 = vmatprep.subr.bf16.mxu1 %v4625_v43  ;;  %v4488_v55 = vcombine.low %v357_v40, %v361_v41  ;;  %v4251_v43 = vcombine.high %v118_v33, %v122_v35  ;;  %v266_v27 = vld [vmem:[#allocation2 + $0x5e8] sm:$0xff] }
  0x89   :  { %v489_v44 = vld [vmem:[#allocation2 + $0xce0] sm:$0xff]  ;;  %2962 = vmatpush1.bf16.msra.mxu1 %v4624_v46  ;;  %v4250_v46 = vcombine.low %v118_v33, %v122_v35  ;;  %v5102_v35 = vcombine.low %v5083_v21, %v5083_v21 }
  0x8a   :  { %v349_v48 = vld [vmem:[#allocation2 + $0x880] sm:$0xff]  ;;  %v4617_v51 = vcombine.high %v485_v42, %v489_v44  ;;  %2922 = vmatprep.subr.bf16.mxu0 %v4489_v47  ;;  %v4616_v56 = vcombine.low %v485_v42, %v489_v44  ;;  %v110_v42 = vld [vmem:[#allocation2 + $0x108] sm:$0xff] }
  0x8b   :  { %v353_v49 = vld [vmem:[#allocation2 + $0x8a0] sm:$0xff]  ;;  %2923 = vmatpush1.bf16.msra.mxu0 %v4488_v55  ;;  %v114_v44 = vld [vmem:[#allocation2 + $0x128] sm:$0xff] }
  0x8c   :  { %v477_v50 = vld [vmem:[#allocation2 + $0xc80] sm:$0xff]  ;;  %v4481_v57 = vcombine.high %v349_v48, %v353_v49  ;;  %2963 = vmatprep.subr.bf16.mxu1 %v4617_v51  ;;  %v4480_v1 = vcombine.low %v349_v48, %v353_v49  ;;  %v4243_v51 = vcombine.high %v110_v42, %v114_v44 }
  0x8d   :  { %v481_v52 = vld [vmem:[#allocation2 + $0xca0] sm:$0xff]  ;;  %2964 = vmatpush1.bf16.msra.mxu1 %v4616_v56  ;;  %v4242_v56 = vcombine.low %v110_v42, %v114_v44  ;;  %v250_v44 = vld [vmem:[#allocation2 + $0x568] sm:$0xff] }
  0x8e   :  { %v341_v60 = vld [vmem:[#allocation2 + $0x840] sm:$0xff]  ;;  %v4609_v63 = vcombine.high %v477_v50, %v481_v52  ;;  %2924 = vmatprep.subr.bf16.mxu0 %v4481_v57  ;;  %v4608_v2 = vcombine.low %v477_v50, %v481_v52  ;;  %v102_v50 = vld [vmem:[#allocation2 + $0xc8] sm:$0xff] }
  0x8f   :  { %v345_v61 = vld [vmem:[#allocation2 + $0x860] sm:$0xff]  ;;  %2925 = vmatpush1.bf16.msra.mxu0 %v4480_v1  ;;  %v106_v52 = vld [vmem:[#allocation2 + $0xe8] sm:$0xff] }
  0x90   :  { %v469_v62 = vld [vmem:[#allocation2 + $0xc40] sm:$0xff]  ;;  %v4473_v3 = vcombine.high %v341_v60, %v345_v61  ;;  %2965 = vmatprep.subr.bf16.mxu1 %v4609_v63  ;;  %v4472_v9 = vcombine.low %v341_v60, %v345_v61  ;;  %v4235_v63 = vcombine.high %v102_v50, %v106_v52 }
  0x91   :  { %v473_v0 = vld [vmem:[#allocation2 + $0xc60] sm:$0xff]  ;;  %2966 = vmatpush1.bf16.msra.mxu1 %v4608_v2  ;;  %v4234_v2 = vcombine.low %v102_v50, %v106_v52  ;;  %v242_v50 = vld [vmem:[#allocation2 + $0x528] sm:$0xff] }
  0x92   :  { %v333_v4 = vld [vmem:[#allocation2 + $0x800] sm:$0xff]  ;;  %v4601_v7 = vcombine.high %v469_v62, %v473_v0  ;;  %2926 = vmatprep.subr.bf16.mxu0 %v4473_v3  ;;  %v4600_v10 = vcombine.low %v469_v62, %v473_v0  ;;  %v94_v62 = vld [vmem:[#allocation2 + $0x88] sm:$0xff] }
  0x93   :  { %v337_v5 = vld [vmem:[#allocation2 + $0x820] sm:$0xff]  ;;  %2927 = vmatpush1.bf16.msra.mxu0 %v4472_v9  ;;  %v98_v0 = vld [vmem:[#allocation2 + $0xa8] sm:$0xff] }
  0x94   :  { %v461_v6 = vld [vmem:[#allocation2 + $0xc00] sm:$0xff]  ;;  %v4465_v11 = vcombine.high %v333_v4, %v337_v5  ;;  %2967 = vmatprep.subr.bf16.mxu1 %v4601_v7  ;;  %v4464_v18 = vcombine.low %v333_v4, %v337_v5  ;;  %v4227_v7 = vcombine.high %v94_v62, %v98_v0  ;;  %v178_v52 = vld [vmem:[#allocation2 + $0x328] sm:$0xff] }
  0x95   :  { %v465_v8 = vld [vmem:[#allocation2 + $0xc20] sm:$0xff]  ;;  %2968 = vmatpush1.bf16.msra.mxu1 %v4600_v10  ;;  %v4226_v10 = vcombine.low %v94_v62, %v98_v0  ;;  %v234_v62 = vld [vmem:[#allocation2 + $0x4e8] sm:$0xff] }
  0x96   :  { %v453_v12 = vld [vmem:[#allocation2 + $0xbc0] sm:$0xff]  ;;  %v4593_v15 = vcombine.high %v461_v6, %v465_v8  ;;  %2928 = vmatprep.subr.bf16.mxu0 %v4465_v11  ;;  %v4592_v20 = vcombine.low %v461_v6, %v465_v8  ;;  %v86_v6 = vld [vmem:[#allocation2 + $0x48] sm:$0xff] }
  0x97   :  { %v457_v13 = vld [vmem:[#allocation2 + $0xbe0] sm:$0xff]  ;;  %2929 = vmatpush1.bf16.msra.mxu0 %v4464_v18  ;;  %v90_v8 = vld [vmem:[#allocation2 + $0x68] sm:$0xff] }
  0x98   :  { %v4585_v22 = vcombine.high %v453_v12, %v457_v13  ;;  %v445_v23 = vld [vmem:[#allocation2 + $0xb80] sm:$0xff]  ;;  %2969 = vmatprep.subr.bf16.mxu1 %v4593_v15  ;;  %v4584_v28 = vcombine.low %v453_v12, %v457_v13  ;;  %v4219_v15 = vcombine.high %v86_v6, %v90_v8  ;;  %v170_v0 = vld [vmem:[#allocation2 + $0x2e8] sm:$0xff] }
  0x99   :  { %v449_v24 = vld [vmem:[#allocation2 + $0xba0] sm:$0xff]  ;;  %2970 = vmatpush1.bf16.msra.mxu1 %v4592_v20  ;;  %v4218_v20 = vcombine.low %v86_v6, %v90_v8  ;;  %v226_v6 = vld [vmem:[#allocation2 + $0x4a8] sm:$0xff] }
  0x9a   :  { %2930 = vmatprep.subr.bf16.mxu0 %v4585_v22  ;;  %v4577_v30 = vcombine.high %v445_v23, %v449_v24  ;;  %v437_v31 = vld [vmem:[#allocation2 + $0xb40] sm:$0xff]  ;;  %2996 = vmatprep.subr.bf16.mxu1 %v4267_v26  ;;  %v4576_v37 = vcombine.low %v445_v23, %v449_v24  ;;  %v198_v23 = vld [vmem:[#allocation2 + $0x3c8] sm:$0xff]  ;;  %v4211_v26 = vcombine.high %v78_v14, %v82_v17 }
  0x9b   :  { %v441_v32 = vld [vmem:[#allocation2 + $0xb60] sm:$0xff]  ;;  %2931 = vmatpush2.bf16.msra.mxu0 %v4584_v28  ;;  %v202_v24 = vld [vmem:[#allocation2 + $0x3e8] sm:$0xff] }
  0x9c   :  { %2988 = vmatmul.mubr.bf16.vlgmr.msra.gmra.mxu1 %v5096_v25  ;;  %2932 = vmatprep.subr.bf16.mxu0 %v4577_v30  ;;  %v4569_v39 = vcombine.high %v437_v31, %v441_v32  ;;  %v429_v40 = vld [vmem:[#allocation2 + $0xb00] sm:$0xff]  ;;  %v4568_v45 = vcombine.low %v437_v31, %v441_v32  ;;  %v4395_v30 = vcombine.high %v262_v53, %v266_v27  ;;  %v190_v31 = vld [vmem:[#allocation2 + $0x388] sm:$0xff] }
  0x9d   :  { %2997 = vmatpush1.bf16.msra.mxu1 %v4266_v29  ;;  %v433_v41 = vld [vmem:[#allocation2 + $0xb20] sm:$0xff]  ;;  %3028 = vmatprep.mubr.bf16.mxu1 %v5064_v58  ;;  %v4210_v29 = vcombine.low %v78_v14, %v82_v17  ;;  %v254_v32 = vld [vmem:[#allocation2 + $0x588] sm:$0xff]  ;;  %v4331_v33 = vcombine.high %v198_v23, %v202_v24 }
  0x9e   :  { %2998 = vmatprep.subr.bf16.mxu1 %v4259_v34  ;;  %v4561_v47 = vcombine.high %v429_v40, %v433_v41  ;;  %v421_v48 = vld [vmem:[#allocation2 + $0xac0] sm:$0xff]  ;;  %v4560_v55 = vcombine.low %v429_v40, %v433_v41  ;;  %v258_v34 = vld [vmem:[#allocation2 + $0x5a8] sm:$0xff] }
  0x9f   :  { %2933 = vmatpush2.bf16.msra.mxu0 %v4576_v37  ;;  %v425_v49 = vld [vmem:[#allocation2 + $0xae0] sm:$0xff]  ;;  %v194_v37 = vld [vmem:[#allocation2 + $0x3a8] sm:$0xff]  ;;  %v4387_v40 = vcombine.high %v254_v32, %v258_v34 }
  0xa0   :  { %2934 = vmatprep.subr.bf16.mxu0 %v4569_v39  ;;  %v4553_v57 = vcombine.high %v421_v48, %v425_v49  ;;  %v413_v60 = vld [vmem:[#allocation2 + $0xa80] sm:$0xff]  ;;  %v4552_v1 = vcombine.low %v421_v48, %v425_v49  ;;  %v4330_v39 = vcombine.low %v198_v23, %v202_v24  ;;  %v182_v41 = vld [vmem:[#allocation2 + $0x348] sm:$0xff]  ;;  %v4323_v42 = vcombine.high %v190_v31, %v194_v37 }
  0xa1   :  { %2999 = vmatpush1.bf16.msra.mxu1 %v4258_v38  ;;  %v417_v61 = vld [vmem:[#allocation2 + $0xaa0] sm:$0xff]  ;;  %v4394_v38 = vcombine.low %v262_v53, %v266_v27  ;;  %v4322_v21 = vcombine.low %v190_v31, %v194_v37  ;;  %v238_v49 = vld [vmem:[#allocation2 + $0x508] sm:$0xff] }
  0xa2   :  { %3000 = vmatprep.subr.bf16.mxu1 %v4251_v43  ;;  %v4545_v3 = vcombine.high %v413_v60, %v417_v61  ;;  %v405_v4 = vld [vmem:[#allocation2 + $0xa40] sm:$0xff]  ;;  %v4544_v9 = vcombine.low %v413_v60, %v417_v61  ;;  %v246_v43 = vld [vmem:[#allocation2 + $0x548] sm:$0xff] }
  0xa3   :  { %2935 = vmatpush2.bf16.msra.mxu0 %v4568_v45  ;;  %v409_v5 = vld [vmem:[#allocation2 + $0xa60] sm:$0xff]  ;;  %v186_v45 = vld [vmem:[#allocation2 + $0x368] sm:$0xff] }
  0xa4   :  { %2936 = vmatprep.subr.bf16.mxu0 %v4561_v47  ;;  %v4537_v11 = vcombine.high %v405_v4, %v409_v5  ;;  %v397_v12 = vld [vmem:[#allocation2 + $0xa00] sm:$0xff]  ;;  %v4536_v18 = vcombine.low %v405_v4, %v409_v5  ;;  %v4379_v47 = vcombine.high %v246_v43, %v250_v44  ;;  %v4315_v48 = vcombine.high %v182_v41, %v186_v45  ;;  %v230_v61 = vld [vmem:[#allocation2 + $0x4c8] sm:$0xff] }
  0xa5   :  { %3001 = vmatpush1.bf16.msra.mxu1 %v4250_v46  ;;  %v401_v13 = vld [vmem:[#allocation2 + $0xa20] sm:$0xff]  ;;  %v4386_v46 = vcombine.low %v254_v32, %v258_v34  ;;  %v222_v5 = vld [vmem:[#allocation2 + $0x488] sm:$0xff] }
  0xa6   :  { %3002 = vmatprep.subr.bf16.mxu1 %v4243_v51  ;;  %v4529_v22 = vcombine.high %v397_v12, %v401_v13  ;;  %v4528_v28 = vcombine.low %v397_v12, %v401_v13  ;;  %v174_v51 = vld [vmem:[#allocation2 + $0x308] sm:$0xff] }
  0xa7   :  { %2937 = vmatpush2.bf16.msra.mxu0 %v4560_v55  ;;  %v4378_v55 = vcombine.low %v246_v43, %v250_v44  ;;  %v4307_v60 = vcombine.high %v174_v51, %v178_v52  ;;  %v162_v8 = vld [vmem:[#allocation2 + $0x2a8] sm:$0xff] }
  0xa8   :  { %2938 = vmatprep.subr.bf16.mxu0 %v4553_v57  ;;  %v4371_v57 = vcombine.high %v238_v49, %v242_v50  ;;  %v214_v13 = vld [vmem:[#allocation2 + $0x448] sm:$0xff] }
  0xa9   :  { %3003 = vmatpush1.bf16.msra.mxu1 %v4242_v56  ;;  %v4314_v56 = vcombine.low %v182_v41, %v186_v45  ;;  %v218_v14 = vld [vmem:[#allocation2 + $0x468] sm:$0xff] }
  0xaa   :  { %3004 = vmatprep.subr.bf16.mxu1 %v4235_v63  ;;  %v166_v63 = vld [vmem:[#allocation2 + $0x2c8] sm:$0xff] }
  0xab   :  { %2939 = vmatpush2.bf16.msra.mxu0 %v4552_v1  ;;  %v4370_v1 = vcombine.low %v238_v49, %v242_v50  ;;  %v4299_v4 = vcombine.high %v166_v63, %v170_v0  ;;  %v154_v17 = vld [vmem:[#allocation2 + $0x268] sm:$0xff] }
  0xac   :  { %2940 = vmatprep.subr.bf16.mxu0 %v4545_v3  ;;  %v4363_v3 = vcombine.high %v230_v61, %v234_v62  ;;  %v206_v24 = vld [vmem:[#allocation2 + $0x408] sm:$0xff] }
  0xad   :  { %3005 = vmatpush1.bf16.msra.mxu1 %v4234_v2  ;;  %v4306_v2 = vcombine.low %v174_v51, %v178_v52  ;;  %v210_v53 = vld [vmem:[#allocation2 + $0x428] sm:$0xff] }
  0xae   :  { %3006 = vmatprep.subr.bf16.mxu1 %v4227_v7  ;;  %v158_v7 = vld [vmem:[#allocation2 + $0x288] sm:$0xff] }
  0xaf   :  { %2941 = vmatpush2.bf16.msra.mxu0 %v4544_v9  ;;  %v4362_v9 = vcombine.low %v230_v61, %v234_v62  ;;  %v4291_v12 = vcombine.high %v158_v7, %v162_v8  ;;  %v146_v27 = vld [vmem:[#allocation2 + $0x228] sm:$0xff] }
  0xb0   :  { %2942 = vmatprep.subr.bf16.mxu0 %v4537_v11  ;;  %v4355_v11 = vcombine.high %v222_v5, %v226_v6  ;;  %v326_v32 = vld [vmem:[#allocation2 + $0x7c8] sm:$0xff] }
  0xb1   :  { %3007 = vmatpush1.bf16.msra.mxu1 %v4226_v10  ;;  %v4298_v10 = vcombine.low %v166_v63, %v170_v0  ;;  %v390_v34 = vld [vmem:[#allocation2 + $0x9c8] sm:$0xff] }
  0xb2   :  { %3008 = vmatprep.subr.bf16.mxu1 %v4219_v15  ;;  %v150_v15 = vld [vmem:[#allocation2 + $0x248] sm:$0xff] }
  0xb3   :  { %2943 = vmatpush2.bf16.msra.mxu0 %v4536_v18  ;;  %v4354_v18 = vcombine.low %v222_v5, %v226_v6  ;;  %v4283_v23 = vcombine.high %v150_v15, %v154_v17  ;;  %v394_v37 = vld [vmem:[#allocation2 + $0x9e8] sm:$0xff] }
  0xb4   :  { %2944 = vmatprep.subr.bf16.mxu0 %v4529_v22  ;;  %v4347_v22 = vcombine.high %v214_v13, %v218_v14  ;;  %v4523_v41 = vcombine.high %v390_v34, %v394_v37  ;;  %v322_v43 = vld [vmem:[#allocation2 + $0x7a8] sm:$0xff] }
  0xb5   :  { %3009 = vmatpush1.bf16.msra.mxu1 %v4218_v20  ;;  %v4290_v20 = vcombine.low %v158_v7, %v162_v8  ;;  %v382_v44 = vld [vmem:[#allocation2 + $0x988] sm:$0xff] }
  0xb6   :  { %3010 = vmatprep.subr.bf16.mxu1 %v4211_v26  ;;  %v142_v26 = vld [vmem:[#allocation2 + $0x208] sm:$0xff] }
  0xb7   :  { %2945 = vmatpush2.bf16.msra.mxu0 %v4528_v28  ;;  %v4346_v28 = vcombine.low %v214_v13, %v218_v14  ;;  %v4275_v31 = vcombine.high %v142_v26, %v146_v27  ;;  %v386_v45 = vld [vmem:[#allocation2 + $0x9a8] sm:$0xff] }
  0xb8   :  { %3037 = vmatprep.subr.bf16.mxu0 %v4395_v30  ;;  %v4339_v30 = vcombine.high %v206_v24, %v210_v53  ;;  %v310_v49 = vld [vmem:[#allocation2 + $0x748] sm:$0xff] }
  0xb9   :  { %3011 = vmatpush1.bf16.msra.mxu1 %v4210_v29  ;;  %v4282_v29 = vcombine.low %v150_v15, %v154_v17  ;;  %v314_v50 = vld [vmem:[#allocation2 + $0x768] sm:$0xff] }
  0xba   :  { %3012 = vmatprep.subr.bf16.mxu1 %v4331_v33  ;;  %2947 = vmatmul.mubr.bf16.vlgmr.msra.gmra.mxu0 %v5102_v35  ;;  %v330_v33 = vld [vmem:[#allocation2 + $0x7e8] sm:$0xff] }
  0xbb   :  { %3038 = vmatpush1.bf16.msra.mxu0 %v4394_v38  ;;  %3069 = vmatprep.mubr.bf16.mxu0 %v5068_v59  ;;  %v4338_v38 = vcombine.low %v206_v24, %v210_v53  ;;  %v374_v51 = vld [vmem:[#allocation2 + $0x948] sm:$0xff] }
  0xbc   :  { %3039 = vmatprep.subr.bf16.mxu0 %v4387_v40  ;;  %v4459_v40 = vcombine.high %v326_v32, %v330_v33  ;;  %v378_v52 = vld [vmem:[#allocation2 + $0x968] sm:$0xff] }
  0xbd   :  { %3013 = vmatpush2.bf16.msra.mxu1 %v4330_v39  ;;  %v4274_v39 = vcombine.low %v142_v26, %v146_v27  ;;  %v302_v61 = vld [vmem:[#allocation2 + $0x708] sm:$0xff] }
  0xbe   :  { %3014 = vmatprep.subr.bf16.mxu1 %v4323_v42  ;;  %v318_v42 = vld [vmem:[#allocation2 + $0x788] sm:$0xff] }
  0xbf   :  { %3040 = vmatpush1.bf16.msra.mxu0 %v4386_v46  ;;  %v4458_v46 = vcombine.low %v326_v32, %v330_v33  ;;  %v306_v62 = vld [vmem:[#allocation2 + $0x728] sm:$0xff] }
  0xc0   :  { %3041 = vmatprep.subr.bf16.mxu0 %v4379_v47  ;;  %v4451_v47 = vcombine.high %v318_v42, %v322_v43  ;;  %v366_v63 = vld [vmem:[#allocation2 + $0x908] sm:$0xff] }
  0xc1   :  { %3015 = vmatpush2.bf16.msra.mxu1 %v4322_v21  ;;  %v4522_v21 = vcombine.low %v390_v34, %v394_v37  ;;  %v370_v0 = vld [vmem:[#allocation2 + $0x928] sm:$0xff] }
  0xc2   :  { %3016 = vmatprep.subr.bf16.mxu1 %v4315_v48  ;;  %v4515_v48 = vcombine.high %v382_v44, %v386_v45  ;;  %v294_v5 = vld [vmem:[#allocation2 + $0x6c8] sm:$0xff] }
  0xc3   :  { %3042 = vmatpush1.bf16.msra.mxu0 %v4378_v55  ;;  %v4450_v55 = vcombine.low %v318_v42, %v322_v43  ;;  %v298_v6 = vld [vmem:[#allocation2 + $0x6e8] sm:$0xff] }
  0xc4   :  { %3043 = vmatprep.subr.bf16.mxu0 %v4371_v57  ;;  %v4443_v57 = vcombine.high %v310_v49, %v314_v50  ;;  %v358_v7 = vld [vmem:[#allocation2 + $0x8c8] sm:$0xff] }
  0xc5   :  { %3017 = vmatpush2.bf16.msra.mxu1 %v4314_v56  ;;  %v4514_v56 = vcombine.low %v382_v44, %v386_v45  ;;  %v362_v8 = vld [vmem:[#allocation2 + $0x8e8] sm:$0xff] }
  0xc6   :  { %3018 = vmatprep.subr.bf16.mxu1 %v4307_v60  ;;  %v4507_v60 = vcombine.high %v374_v51, %v378_v52  ;;  %v286_v13 = vld [vmem:[#allocation2 + $0x688] sm:$0xff] }
  0xc7   :  { %3044 = vmatpush1.bf16.msra.mxu0 %v4370_v1  ;;  %v4442_v1 = vcombine.low %v310_v49, %v314_v50  ;;  %v290_v14 = vld [vmem:[#allocation2 + $0x6a8] sm:$0xff] }
  0xc8   :  { %3045 = vmatprep.subr.bf16.mxu0 %v4363_v3  ;;  %v4435_v3 = vcombine.high %v302_v61, %v306_v62  ;;  %v350_v15 = vld [vmem:[#allocation2 + $0x888] sm:$0xff] }
  0xc9   :  { %3019 = vmatpush2.bf16.msra.mxu1 %v4306_v2  ;;  %v4506_v2 = vcombine.low %v374_v51, %v378_v52  ;;  %v354_v17 = vld [vmem:[#allocation2 + $0x8a8] sm:$0xff] }
  0xca   :  { %3020 = vmatprep.subr.bf16.mxu1 %v4299_v4  ;;  %v4499_v4 = vcombine.high %v366_v63, %v370_v0  ;;  %v278_v24 = vld [vmem:[#allocation2 + $0x648] sm:$0xff] }
  0xcb   :  { %3046 = vmatpush1.bf16.msra.mxu0 %v4362_v9  ;;  %v4434_v9 = vcombine.low %v302_v61, %v306_v62  ;;  %v282_v53 = vld [vmem:[#allocation2 + $0x668] sm:$0xff] }
  0xcc   :  { %3047 = vmatprep.subr.bf16.mxu0 %v4355_v11  ;;  %v4427_v11 = vcombine.high %v294_v5, %v298_v6  ;;  %v342_v26 = vld [vmem:[#allocation2 + $0x848] sm:$0xff] }
  0xcd   :  { %3021 = vmatpush2.bf16.msra.mxu1 %v4298_v10  ;;  %v4498_v10 = vcombine.low %v366_v63, %v370_v0  ;;  %v346_v27 = vld [vmem:[#allocation2 + $0x868] sm:$0xff] }
  0xce   :  { %3022 = vmatprep.subr.bf16.mxu1 %v4291_v12  ;;  %v4491_v12 = vcombine.high %v358_v7, %v362_v8  ;;  %v270_v32 = vld [vmem:[#allocation2 + $0x608] sm:$0xff] }
  0xcf   :  { %3048 = vmatpush1.bf16.msra.mxu0 %v4354_v18  ;;  %v4426_v18 = vcombine.low %v294_v5, %v298_v6  ;;  %v274_v33 = vld [vmem:[#allocation2 + $0x628] sm:$0xff] }
  0xd0   :  { %3049 = vmatprep.subr.bf16.mxu0 %v4347_v22  ;;  %v4419_v22 = vcombine.high %v286_v13, %v290_v14  ;;  %v334_v34 = vld [vmem:[#allocation2 + $0x808] sm:$0xff] }
  0xd1   :  { %3023 = vmatpush2.bf16.msra.mxu1 %v4290_v20  ;;  %v4490_v20 = vcombine.low %v358_v7, %v362_v8  ;;  %v338_v37 = vld [vmem:[#allocation2 + $0x828] sm:$0xff] }
  0xd2   :  { %3024 = vmatprep.subr.bf16.mxu1 %v4283_v23  ;;  %v4483_v23 = vcombine.high %v350_v15, %v354_v17  ;;  %v518_v42 = vld [vmem:[#allocation2 + $0xdc8] sm:$0xff] }
  0xd3   :  { %3050 = vmatpush1.bf16.msra.mxu0 %v4346_v28  ;;  %v4418_v28 = vcombine.low %v286_v13, %v290_v14  ;;  %v522_v43 = vld [vmem:[#allocation2 + $0xde8] sm:$0xff] }
  0xd4   :  { %3051 = vmatprep.subr.bf16.mxu0 %v4339_v30  ;;  %v4411_v30 = vcombine.high %v278_v24, %v282_v53  ;;  %v454_v44 = vld [vmem:[#allocation2 + $0xbc8] sm:$0xff] }
  0xd5   :  { %3025 = vmatpush2.bf16.msra.mxu1 %v4282_v29  ;;  %v4482_v29 = vcombine.low %v350_v15, %v354_v17  ;;  %v458_v45 = vld [vmem:[#allocation2 + $0xbe8] sm:$0xff] }
  0xd6   :  { %3026 = vmatprep.subr.bf16.mxu1 %v4275_v31  ;;  %v4475_v31 = vcombine.high %v342_v26, %v346_v27  ;;  %v510_v49 = vld [vmem:[#allocation2 + $0xd88] sm:$0xff] }
  0xd7   :  { %3052 = vmatpush1.bf16.msra.mxu0 %v4338_v38  ;;  %v4410_v38 = vcombine.low %v278_v24, %v282_v53  ;;  %v514_v50 = vld [vmem:[#allocation2 + $0xda8] sm:$0xff] }
  0xd8   :  { %3053 = vmatprep.subr.bf16.mxu0 %v4459_v40  ;;  %v4403_v40 = vcombine.high %v270_v32, %v274_v33  ;;  %v446_v51 = vld [vmem:[#allocation2 + $0xb88] sm:$0xff] }
  0xd9   :  { %3027 = vmatpush2.bf16.msra.mxu1 %v4274_v39  ;;  %v4474_v39 = vcombine.low %v342_v26, %v346_v27  ;;  %v450_v52 = vld [vmem:[#allocation2 + $0xba8] sm:$0xff] }
  0xda   :  { %3078 = vmatprep.subr.bf16.mxu1 %v4523_v41  ;;  %v4467_v41 = vcombine.high %v334_v34, %v338_v37  ;;  %v502_v61 = vld [vmem:[#allocation2 + $0xd48] sm:$0xff] }
  0xdb   :  { %3054 = vmatpush2.bf16.msra.mxu0 %v4458_v46  ;;  %v4402_v46 = vcombine.low %v270_v32, %v274_v33  ;;  %v506_v62 = vld [vmem:[#allocation2 + $0xd68] sm:$0xff] }
  0xdc   :  { %3029 = vmatmul.mubr.bf16.vlgmr.msra.gmra.mxu1 %v5074_v16  ;;  %3055 = vmatprep.subr.bf16.mxu0 %v4451_v47  ;;  %v4651_v47 = vcombine.high %v518_v42, %v522_v43  ;;  %v438_v63 = vld [vmem:[#allocation2 + $0xb48] sm:$0xff] }
  0xdd   :  { %3079 = vmatpush1.bf16.msra.mxu1 %v4522_v21  ;;  %3110 = vmatprep.mubr.bf16.mxu1 %v5088_v54  ;;  %v4466_v21 = vcombine.low %v334_v34, %v338_v37  ;;  %v442_v0 = vld [vmem:[#allocation2 + $0xb68] sm:$0xff] }
  0xde   :  { %3080 = vmatprep.subr.bf16.mxu1 %v4515_v48  ;;  %v4587_v48 = vcombine.high %v454_v44, %v458_v45  ;;  %v494_v5 = vld [vmem:[#allocation2 + $0xd08] sm:$0xff] }
  0xdf   :  { %3056 = vmatpush2.bf16.msra.mxu0 %v4450_v55  ;;  %v4650_v55 = vcombine.low %v518_v42, %v522_v43  ;;  %v498_v6 = vld [vmem:[#allocation2 + $0xd28] sm:$0xff] }
  0xe0   :  { %3057 = vmatprep.subr.bf16.mxu0 %v4443_v57  ;;  %v4643_v57 = vcombine.high %v510_v49, %v514_v50  ;;  %v430_v7 = vld [vmem:[#allocation2 + $0xb08] sm:$0xff] }
  0xe1   :  { %3081 = vmatpush1.bf16.msra.mxu1 %v4514_v56  ;;  %v4586_v56 = vcombine.low %v454_v44, %v458_v45  ;;  %v434_v8 = vld [vmem:[#allocation2 + $0xb28] sm:$0xff] }
  0xe2   :  { %3082 = vmatprep.subr.bf16.mxu1 %v4507_v60  ;;  %v4579_v60 = vcombine.high %v446_v51, %v450_v52  ;;  %v486_v13 = vld [vmem:[#allocation2 + $0xcc8] sm:$0xff] }
  0xe3   :  { %3058 = vmatpush2.bf16.msra.mxu0 %v4442_v1  ;;  %v4642_v1 = vcombine.low %v510_v49, %v514_v50  ;;  %v490_v14 = vld [vmem:[#allocation2 + $0xce8] sm:$0xff]  ;;  %v135_v49 = vld [vmem:[#allocation2 + $0x1d0] sm:$0xff] }
  0xe4   :  { %3059 = vmatprep.subr.bf16.mxu0 %v4435_v3  ;;  %v4635_v3 = vcombine.high %v502_v61, %v506_v62  ;;  %v422_v15 = vld [vmem:[#allocation2 + $0xac8] sm:$0xff]  ;;  %v139_v50 = vld [vmem:[#allocation2 + $0x1f0] sm:$0xff] }
  0xe5   :  { %3083 = vmatpush1.bf16.msra.mxu1 %v4506_v2  ;;  %v4578_v2 = vcombine.low %v446_v51, %v450_v52  ;;  %v426_v17 = vld [vmem:[#allocation2 + $0xae8] sm:$0xff]  ;;  %v263_v51 = vld [vmem:[#allocation2 + $0x5d0] sm:$0xff] }
  0xe6   :  { %3084 = vmatprep.subr.bf16.mxu1 %v4499_v4  ;;  %v4571_v4 = vcombine.high %v438_v63, %v442_v0  ;;  %v478_v24 = vld [vmem:[#allocation2 + $0xc88] sm:$0xff]  ;;  %v267_v52 = vld [vmem:[#allocation2 + $0x5f0] sm:$0xff] }
  0xe7   :  { %3060 = vmatpush2.bf16.msra.mxu0 %v4434_v9  ;;  %v4634_v9 = vcombine.low %v502_v61, %v506_v62  ;;  %v482_v53 = vld [vmem:[#allocation2 + $0xca8] sm:$0xff]  ;;  %v127_v61 = vld [vmem:[#allocation2 + $0x190] sm:$0xff] }
  0xe8   :  { %3061 = vmatprep.subr.bf16.mxu0 %v4427_v11  ;;  %v4627_v11 = vcombine.high %v494_v5, %v498_v6  ;;  %v414_v26 = vld [vmem:[#allocation2 + $0xa88] sm:$0xff]  ;;  %v131_v62 = vld [vmem:[#allocation2 + $0x1b0] sm:$0xff] }
  0xe9   :  { %3085 = vmatpush1.bf16.msra.mxu1 %v4498_v10  ;;  %v4570_v10 = vcombine.low %v438_v63, %v442_v0  ;;  %v418_v27 = vld [vmem:[#allocation2 + $0xaa8] sm:$0xff]  ;;  %v255_v63 = vld [vmem:[#allocation2 + $0x590] sm:$0xff] }
  0xea   :  { %3086 = vmatprep.subr.bf16.mxu1 %v4491_v12  ;;  %v4563_v12 = vcombine.high %v430_v7, %v434_v8  ;;  %v470_v32 = vld [vmem:[#allocation2 + $0xc48] sm:$0xff]  ;;  %v259_v0 = vld [vmem:[#allocation2 + $0x5b0] sm:$0xff] }
  0xeb   :  { %3062 = vmatpush2.bf16.msra.mxu0 %v4426_v18  ;;  %v4626_v18 = vcombine.low %v494_v5, %v498_v6  ;;  %v474_v33 = vld [vmem:[#allocation2 + $0xc68] sm:$0xff]  ;;  %v119_v5 = vld [vmem:[#allocation2 + $0x150] sm:$0xff] }
  0xec   :  { %3063 = vmatprep.subr.bf16.mxu0 %v4419_v22  ;;  %v4619_v22 = vcombine.high %v486_v13, %v490_v14  ;;  %v406_v34 = vld [vmem:[#allocation2 + $0xa48] sm:$0xff]  ;;  %v123_v6 = vld [vmem:[#allocation2 + $0x170] sm:$0xff] }
  0xed   :  { %3087 = vmatpush1.bf16.msra.mxu1 %v4490_v20  ;;  %v4562_v20 = vcombine.low %v430_v7, %v434_v8  ;;  %v410_v37 = vld [vmem:[#allocation2 + $0xa68] sm:$0xff]  ;;  %v247_v7 = vld [vmem:[#allocation2 + $0x550] sm:$0xff] }
  0xee   :  { %3088 = vmatprep.subr.bf16.mxu1 %v4483_v23  ;;  %v4555_v23 = vcombine.high %v422_v15, %v426_v17  ;;  %v462_v42 = vld [vmem:[#allocation2 + $0xc08] sm:$0xff]  ;;  %v251_v8 = vld [vmem:[#allocation2 + $0x570] sm:$0xff] }
  0xef   :  { %3064 = vmatpush2.bf16.msra.mxu0 %v4418_v28  ;;  %v4618_v28 = vcombine.low %v486_v13, %v490_v14  ;;  %v466_v43 = vld [vmem:[#allocation2 + $0xc28] sm:$0xff]  ;;  %v111_v13 = vld [vmem:[#allocation2 + $0x110] sm:$0xff] }
  0xf0   :  { %3065 = vmatprep.subr.bf16.mxu0 %v4411_v30  ;;  %v4611_v30 = vcombine.high %v478_v24, %v482_v53  ;;  %v398_v44 = vld [vmem:[#allocation2 + $0xa08] sm:$0xff]  ;;  %v115_v14 = vld [vmem:[#allocation2 + $0x130] sm:$0xff] }
  0xf1   :  { %3089 = vmatpush1.bf16.msra.mxu1 %v4482_v29  ;;  %v4554_v29 = vcombine.low %v422_v15, %v426_v17  ;;  %v402_v45 = vld [vmem:[#allocation2 + $0xa28] sm:$0xff]  ;;  %v239_v15 = vld [vmem:[#allocation2 + $0x510] sm:$0xff] }
  0xf2   :  { %3090 = vmatprep.subr.bf16.mxu1 %v4475_v31  ;;  %v4547_v31 = vcombine.high %v414_v26, %v418_v27  ;;  %v243_v17 = vld [vmem:[#allocation2 + $0x530] sm:$0xff] }
  0xf3   :  { %3066 = vmatpush2.bf16.msra.mxu0 %v4410_v38  ;;  %v4610_v38 = vcombine.low %v478_v24, %v482_v53  ;;  %v107_v24 = vld [vmem:[#allocation2 + $0xf0] sm:$0xff] }
  0xf4   :  { %3067 = vmatprep.subr.bf16.mxu0 %v4403_v40  ;;  %v4603_v40 = vcombine.high %v470_v32, %v474_v33  ;;  %v231_v53 = vld [vmem:[#allocation2 + $0x4d0] sm:$0xff] }
  0xf5   :  { %3091 = vmatpush1.bf16.msra.mxu1 %v4474_v39  ;;  %v4546_v39 = vcombine.low %v414_v26, %v418_v27  ;;  %v235_v26 = vld [vmem:[#allocation2 + $0x4f0] sm:$0xff]  ;;  %v4244_v27 = vcombine.low %v111_v13, %v115_v14 }
  0xf6   :  { %3092 = vmatprep.subr.bf16.mxu1 %v4467_v41  ;;  %v4539_v41 = vcombine.high %v406_v34, %v410_v37 }
  0xf7   :  { %3068 = vmatpush2.bf16.msra.mxu0 %v4402_v46  ;;  %v4602_v46 = vcombine.low %v470_v32, %v474_v33  ;;  %v99_v32 = vld [vmem:[#allocation2 + $0xb0] sm:$0xff] }
  0xf8   :  { %3119 = vmatprep.subr.bf16.mxu0 %v4651_v47  ;;  %v4595_v47 = vcombine.high %v462_v42, %v466_v43  ;;  %v223_v33 = vld [vmem:[#allocation2 + $0x490] sm:$0xff] }
  0xf9   :  { %3093 = vmatpush1.bf16.msra.mxu1 %v4466_v21  ;;  %v4538_v21 = vcombine.low %v406_v34, %v410_v37  ;;  %v227_v34 = vld [vmem:[#allocation2 + $0x4b0] sm:$0xff] }
  0xfa   :  { %3094 = vmatprep.subr.bf16.mxu1 %v4587_v48  ;;  %3070 = vmatmul.mubr.bf16.vlgmr.msra.gmra.mxu0 %v5078_v19  ;;  %v4531_v48 = vcombine.high %v398_v44, %v402_v45 }
  0xfb   :  { %3120 = vmatpush1.bf16.msra.mxu0 %v4650_v55  ;;  %3151 = vmatprep.mubr.bf16.mxu0 %v5008_v36  ;;  %v4594_v55 = vcombine.low %v462_v42, %v466_v43  ;;  %v91_v42 = vld [vmem:[#allocation2 + $0x70] sm:$0xff] }
  0xfc   :  { %3121 = vmatprep.subr.bf16.mxu0 %v4643_v57  ;;  %v4269_v57 = vcombine.high %v135_v49, %v139_v50  ;;  %v215_v43 = vld [vmem:[#allocation2 + $0x450] sm:$0xff] }
  0xfd   :  { %3095 = vmatpush2.bf16.msra.mxu1 %v4586_v56  ;;  %v4530_v56 = vcombine.low %v398_v44, %v402_v45  ;;  %v219_v44 = vld [vmem:[#allocation2 + $0x470] sm:$0xff] }
  0xfe   :  { %3096 = vmatprep.subr.bf16.mxu1 %v4579_v60  ;;  %v4397_v60 = vcombine.high %v263_v51, %v267_v52 }
  0xff   :  { %3122 = vmatpush1.bf16.msra.mxu0 %v4642_v1  ;;  %v4268_v1 = vcombine.low %v135_v49, %v139_v50  ;;  %v79_v49 = vld [vmem:[#allocation2 + $0x10] sm:$0xff] }
 0x100   :  { %3123 = vmatprep.subr.bf16.mxu0 %v4635_v3  ;;  %v4261_v3 = vcombine.high %v127_v61, %v131_v62  ;;  %v83_v50 = vld [vmem:[#allocation2 + $0x30] sm:$0xff] }
 0x101   :  { %3097 = vmatpush2.bf16.msra.mxu1 %v4578_v2  ;;  %v4396_v2 = vcombine.low %v263_v51, %v267_v52  ;;  %v207_v51 = vld [vmem:[#allocation2 + $0x410] sm:$0xff] }
 0x102   :  { %3098 = vmatprep.subr.bf16.mxu1 %v4571_v4  ;;  %v4389_v4 = vcombine.high %v255_v63, %v259_v0  ;;  %v211_v52 = vld [vmem:[#allocation2 + $0x430] sm:$0xff] }
 0x103   :  { %3124 = vmatpush1.bf16.msra.mxu0 %v4634_v9  ;;  %v4260_v9 = vcombine.low %v127_v61, %v131_v62  ;;  %v4341_v61 = vcombine.high %v207_v51, %v211_v52  ;;  %v199_v62 = vld [vmem:[#allocation2 + $0x3d0] sm:$0xff] }
 0x104   :  { %3125 = vmatprep.subr.bf16.mxu0 %v4627_v11  ;;  %v4253_v11 = vcombine.high %v119_v5, %v123_v6 }
 0x105   :  { %3099 = vmatpush2.bf16.msra.mxu1 %v4570_v10  ;;  %v4388_v10 = vcombine.low %v255_v63, %v259_v0  ;;  %v203_v63 = vld [vmem:[#allocation2 + $0x3f0] sm:$0xff] }
 0x106   :  { %3100 = vmatprep.subr.bf16.mxu1 %v4563_v12  ;;  %v4381_v12 = vcombine.high %v247_v7, %v251_v8  ;;  %v327_v0 = vld [vmem:[#allocation2 + $0x7d0] sm:$0xff] }
 0x107   :  { %3126 = vmatpush1.bf16.msra.mxu0 %v4626_v18  ;;  %v4380_v18 = vcombine.low %v247_v7, %v251_v8 }
 0x108   :  { %3127 = vmatprep.subr.bf16.mxu0 %v4619_v22  ;;  %v4373_v22 = vcombine.high %v239_v15, %v243_v17 }
 0x109   :  { %3101 = vmatpush2.bf16.msra.mxu1 %v4562_v20  ;;  %v4245_v20 = vcombine.high %v111_v13, %v115_v14  ;;  %v4332_v14 = vcombine.low %v199_v62, %v203_v63 }
 0x10a   :  { %3102 = vmatprep.subr.bf16.mxu1 %v4555_v23  ;;  %v103_v23 = vld [vmem:[#allocation2 + $0xd0] sm:$0xff] }
 0x10b   :  { %3128 = vmatpush1.bf16.msra.mxu0 %v4618_v28  ;;  %v4372_v28 = vcombine.low %v239_v15, %v243_v17  ;;  %v4236_v37 = vcombine.low %v103_v23, %v107_v24 }
 0x10c   :  { %3129 = vmatprep.subr.bf16.mxu0 %v4611_v30  ;;  %v4365_v30 = vcombine.high %v231_v53, %v235_v26 }
 0x10d   :  { %3103 = vmatpush2.bf16.msra.mxu1 %v4554_v29  ;;  %v4237_v29 = vcombine.high %v103_v23, %v107_v24  ;;  %v311_v24 = vld [vmem:[#allocation2 + $0x750] sm:$0xff] }
 0x10e   :  { %3104 = vmatprep.subr.bf16.mxu1 %v4547_v31  ;;  %v95_v31 = vld [vmem:[#allocation2 + $0x90] sm:$0xff] }
 0x10f   :  { %3130 = vmatpush1.bf16.msra.mxu0 %v4610_v38  ;;  %v4364_v38 = vcombine.low %v231_v53, %v235_v26  ;;  %v4228_v45 = vcombine.low %v95_v31, %v99_v32  ;;  %v315_v53 = vld [vmem:[#allocation2 + $0x770] sm:$0xff] }
 0x110   :  { %3131 = vmatprep.subr.bf16.mxu0 %v4603_v40  ;;  %v4357_v40 = vcombine.high %v223_v33, %v227_v34 }
 0x111   :  { %3105 = vmatpush2.bf16.msra.mxu1 %v4546_v39  ;;  %v4229_v39 = vcombine.high %v95_v31, %v99_v32 }
 0x112   :  { %3106 = vmatprep.subr.bf16.mxu1 %v4539_v41  ;;  %v87_v41 = vld [vmem:[#allocation2 + $0x50] sm:$0xff] }
 0x113   :  { %3132 = vmatpush1.bf16.msra.mxu0 %v4602_v46  ;;  %v527_v46 = vlaneseq }
 0x114   :  { %3133 = vmatprep.subr.bf16.mxu0 %v4595_v47  ;;  %v4221_v47 = vcombine.high %v87_v41, %v91_v42 }
 0x115   :  { %3107 = vmatpush2.bf16.msra.mxu1 %v4538_v21  ;;  %v4356_v21 = vcombine.low %v223_v33, %v227_v34 }
 0x116   :  { %3108 = vmatprep.subr.bf16.mxu1 %v4531_v48  ;;  %v4349_v48 = vcombine.high %v215_v43, %v219_v44 }
 0x117   :  { %3134 = vmatpush1.bf16.msra.mxu0 %v4594_v55  ;;  %v4220_v55 = vcombine.low %v87_v41, %v91_v42  ;;  %v303_v41 = vld [vmem:[#allocation2 + $0x710] sm:$0xff] }
 0x118   :  { %3160 = vmatprep.subr.bf16.mxu0 %v4269_v57  ;;  %v4348_v57 = vcombine.low %v215_v43, %v219_v44  ;;  %v307_v42 = vld [vmem:[#allocation2 + $0x730] sm:$0xff] }
 0x119   :  { %3109 = vmatpush2.bf16.msra.mxu1 %v4530_v56  ;;  %v5114_v56 = vshrl.u32 %v527_v46, 7 }
 0x11a   :  { %3201 = vmatprep.subr.bf16.mxu1 %v4397_v60  ;;  %3152 = vmatmul.mubr.bf16.vlgmr.msra.gmra.mxu0 %v5096_v25  ;;  %v4252_v25 = vcombine.low %v119_v5, %v123_v6  ;;  %v4213_v60 = vcombine.high %v79_v49, %v83_v50  ;;  %v5117_v5 = vld [vmem:[#allocation5] sm:$0xff]  ;;  %v4333_v6 = vcombine.high %v199_v62, %v203_v63  ;;  %v159_v63 = vld [vmem:[#allocation2 + $0x290] sm:$0xff] }
 0x11b   :  { %3161 = vmatpush1.bf16.msra.mxu0 %v4268_v1  ;;  %3192 = vmatprep.mubr.bf16.mxu0 %v5064_v58  ;;  %v331_v1 = vld [vmem:[#allocation2 + $0x7f0] sm:$0xff]  ;;  %v533_v8 = vsub.s32 1, %v5114_v56 }
 0x11c   :  { %3111 = vmatmul.mubr.bf16.vlgmr.msra.gmra.mxu1 %v5102_v35  ;;  %3162 = vmatprep.subr.bf16.mxu0 %v4261_v3  ;;  %v529_v3 = vsub.s32 0, %v5114_v56  ;;  %v4461_v7 = vcombine.high %v327_v0, %v331_v1  ;;  %v4460_v15 = vcombine.low %v327_v0, %v331_v1  ;;  %v163_v0 = vld [vmem:[#allocation2 + $0x2b0] sm:$0xff] }
 0x11d   :  { %3202 = vmatpush1.bf16.msra.mxu1 %v4396_v2  ;;  %3233 = vmatprep.mubr.bf16.mxu1 %v5068_v59  ;;  %v4212_v2 = vcombine.low %v79_v49, %v83_v50  ;;  %v4437_v49 = vcombine.high %v303_v41, %v307_v42  ;;  %v167_v50 = vld [vmem:[#allocation2 + $0x2d0] sm:$0xff] }
 0x11e   :  { %3203 = vmatprep.subr.bf16.mxu1 %v4389_v4  ;;  %v4340_v4 = vcombine.low %v207_v51, %v211_v52  ;;  %v530_v13 = vrot.slane %v5117_v5, %v529_v3  ;;  %v171_v51 = vld [vmem:[#allocation2 + $0x2f0] sm:$0xff] }
 0x11f   :  { %3163 = vmatpush1.bf16.msra.mxu0 %v4260_v9  ;;  %v191_v9 = vld [vmem:[#allocation2 + $0x390] sm:$0xff]  ;;  %v4300_v3 = vcombine.low %v167_v50, %v171_v51 }
 0x120   :  { %3164 = vmatprep.subr.bf16.mxu0 %v4253_v11  ;;  %v319_v11 = vld [vmem:[#allocation2 + $0x790] sm:$0xff] }
 0x121   :  { %3204 = vmatpush1.bf16.msra.mxu1 %v4388_v10  ;;  %v195_v10 = vld [vmem:[#allocation2 + $0x3b0] sm:$0xff] }
 0x122   :  { %3205 = vmatprep.subr.bf16.mxu1 %v4381_v12  ;;  %v323_v12 = vld [vmem:[#allocation2 + $0x7b0] sm:$0xff]  ;;  %v4325_v17 = vcombine.high %v191_v9, %v195_v10 }
 0x123   :  { %3165 = vmatpush1.bf16.msra.mxu0 %v4252_v25  ;;  %v534_v25 = vrot.slane %v5117_v5, %v533_v8  ;;  %v295_v52 = vld [vmem:[#allocation2 + $0x6d0] sm:$0xff] }
 0x124   :  { %3166 = vmatprep.subr.bf16.mxu0 %v4245_v20  ;;  %v183_v20 = vld [vmem:[#allocation2 + $0x350] sm:$0xff] }
 0x125   :  { %3206 = vmatpush1.bf16.msra.mxu1 %v4380_v18  ;;  %v4453_v18 = vcombine.high %v319_v11, %v323_v12  ;;  %v287_v1 = vld [vmem:[#allocation2 + $0x690] sm:$0xff] }
 0x126   :  { %3207 = vmatprep.subr.bf16.mxu1 %v4373_v22  ;;  %v187_v22 = vld [vmem:[#allocation2 + $0x370] sm:$0xff] }
 0x127   :  { %3167 = vmatpush1.bf16.msra.mxu0 %v4244_v27  ;;  %v4317_v31 = vcombine.high %v183_v20, %v187_v22  ;;  %v151_v8 = vld [vmem:[#allocation2 + $0x250] sm:$0xff] }
 0x128   :  { %3168 = vmatprep.subr.bf16.mxu0 %v4237_v29 }
 0x129   :  { %3208 = vmatpush1.bf16.msra.mxu1 %v4372_v28  ;;  %v4324_v28 = vcombine.low %v191_v9, %v195_v10  ;;  %v155_v9 = vld [vmem:[#allocation2 + $0x270] sm:$0xff] }
 0x12a   :  { %3209 = vmatprep.subr.bf16.mxu1 %v4365_v30  ;;  %v4452_v30 = vcombine.low %v319_v11, %v323_v12  ;;  %v279_v10 = vld [vmem:[#allocation2 + $0x650] sm:$0xff]  ;;  %v4292_v12 = vcombine.low %v159_v63, %v163_v0 }
 0x12b   :  { %3169 = vmatpush1.bf16.msra.mxu0 %v4236_v37  ;;  %v4445_v37 = vcombine.high %v311_v24, %v315_v53  ;;  %v283_v11 = vld [vmem:[#allocation2 + $0x670] sm:$0xff] }
 0x12c   :  { %3170 = vmatprep.subr.bf16.mxu0 %v4229_v39  ;;  %v179_v39 = vld [vmem:[#allocation2 + $0x330] sm:$0xff] }
 0x12d   :  { %3210 = vmatpush1.bf16.msra.mxu1 %v4364_v38  ;;  %v175_v38 = vld [vmem:[#allocation2 + $0x310] sm:$0xff] }
 0x12e   :  { %3211 = vmatprep.subr.bf16.mxu1 %v4357_v40 }
 0x12f   :  { %3171 = vmatpush1.bf16.msra.mxu0 %v4228_v45  ;;  %v4316_v45 = vcombine.low %v183_v20, %v187_v22  ;;  %v275_v20 = vld [vmem:[#allocation2 + $0x630] sm:$0xff]  ;;  %v4284_v22 = vcombine.low %v151_v8, %v155_v9 }
 0x130   :  { %3172 = vmatprep.subr.bf16.mxu0 %v4221_v47  ;;  %v4309_v47 = vcombine.high %v175_v38, %v179_v39 }
 0x131   :  { %3212 = vmatpush1.bf16.msra.mxu1 %v4356_v21  ;;  %v4444_v21 = vcombine.low %v311_v24, %v315_v53 }
 0x132   :  { %3213 = vmatprep.subr.bf16.mxu1 %v4349_v48 }
 0x133   :  { %3173 = vmatpush1.bf16.msra.mxu0 %v4220_v55  ;;  %v299_v55 = vld [vmem:[#allocation2 + $0x6f0] sm:$0xff] }
 0x134   :  { %3174 = vmatprep.subr.bf16.mxu0 %v4213_v60  ;;  %v4436_v60 = vcombine.low %v303_v41, %v307_v42  ;;  %v4429_v62 = vcombine.high %v295_v52, %v299_v55 }
 0x135   :  { %3214 = vmatpush1.bf16.msra.mxu1 %v4348_v57  ;;  %v4308_v57 = vcombine.low %v175_v38, %v179_v39  ;;  %v387_v38 = vld [vmem:[#allocation2 + $0x9b0] sm:$0xff] }
 0x136   :  { %3215 = vmatprep.subr.bf16.mxu1 %v4341_v61  ;;  %v4301_v61 = vcombine.high %v167_v50, %v171_v51  ;;  %v511_v39 = vld [vmem:[#allocation2 + $0xd90] sm:$0xff] }
 0x137   :  { %3175 = vmatpush1.bf16.msra.mxu0 %v4212_v2  ;;  %v291_v2 = vld [vmem:[#allocation2 + $0x6b0] sm:$0xff] }
 0x138   :  { %3176 = vmatprep.subr.bf16.mxu0 %v4333_v6  ;;  %v4293_v6 = vcombine.high %v159_v63, %v163_v0  ;;  %v499_v63 = vld [vmem:[#allocation2 + $0xd30] sm:$0xff] }
 0x139   :  { %3216 = vmatpush1.bf16.msra.mxu1 %v4340_v4  ;;  %v4428_v4 = vcombine.low %v295_v52, %v299_v55 }
 0x13a   :  { %3217 = vmatprep.subr.bf16.mxu1 %v4461_v7  ;;  %v2866_v23 = vpop.f32.mrf.mxu0  ;;  %v4421_v7 = vcombine.high %v287_v1, %v291_v2 }
 0x13b   :  { %v2867_v26 = vadd.f32 %v2866_v23, %v530_v13  ;;  %3177 = vmatpush2.bf16.msra.mxu0 %v4332_v14  ;;  %v4420_v13 = vcombine.low %v287_v1, %v291_v2  ;;  %v4285_v14 = vcombine.high %v151_v8, %v155_v9  ;;  %v4412_v23 = vcombine.low %v279_v10, %v283_v11  ;;  %v363_v8 = vld [vmem:[#allocation2 + $0x8f0] sm:$0xff] }
 0x13c   :  { %v2907_v27 = vpop.f32.mrf.mxu1  ;;  %v2868_v29 = vpop.f32.mrf.mxu0  ;;  %3178 = vmatprep.subr.bf16.mxu0 %v4325_v17  ;;  %v143_v17 = vld [vmem:[#allocation2 + $0x210] sm:$0xff] }
 0x13d   :  { %3218 = vmatpush2.bf16.msra.mxu1 %v4460_v15  ;;  %v5122_v32 = vadd.f32 %v2907_v27, %v2867_v26  ;;  %v2869_v33 = vadd.f32 %v2868_v29, %v534_v25  ;;  %v4413_v15 = vcombine.high %v279_v10, %v283_v11  ;;  %v147_v25 = vld [vmem:[#allocation2 + $0x230] sm:$0xff] }
 0x13e   :  { %v2909_v34 = vpop.f32.mrf.mxu1  ;;  %3219 = vmatprep.subr.bf16.mxu1 %v4453_v18  ;;  %v2870_v40 = vpop.f32.mrf.mxu0  ;;  %v271_v18 = vld [vmem:[#allocation2 + $0x610] sm:$0xff]  ;;  %v4277_v24 = vcombine.high %v143_v17, %v147_v25 }
 0x13f   :  { %v5124_v43 = vadd.f32 %v2909_v34, %v2869_v33  ;;  %3179 = vmatpush2.bf16.msra.mxu0 %v4324_v28  ;;  %v4405_v53 = vcombine.high %v271_v18, %v275_v20  ;;  %v391_v26 = vld [vmem:[#allocation2 + $0x9d0] sm:$0xff] }
 0x140   :  { %v2911_v44 = vpop.f32.mrf.mxu1  ;;  %v2871_v46 = vpop.f32.mrf.mxu0  ;;  %3180 = vmatprep.subr.bf16.mxu0 %v4317_v31  ;;  %v395_v27 = vld [vmem:[#allocation2 + $0x9f0] sm:$0xff]  ;;  %v4404_v31 = vcombine.low %v271_v18, %v275_v20 }
 0x141   :  { %3220 = vmatpush2.bf16.msra.mxu1 %v4452_v30  ;;  %v519_v28 = vld [vmem:[#allocation2 + $0xdd0] sm:$0xff]  ;;  %v4276_v30 = vcombine.low %v143_v17, %v147_v25  ;;  %v4525_v33 = vcombine.high %v391_v26, %v395_v27  ;;  %v4524_v41 = vcombine.low %v391_v26, %v395_v27 }
 0x142   :  { %v2912_v48 = vpop.f32.mrf.mxu1  ;;  %3221 = vmatprep.subr.bf16.mxu1 %v4445_v37  ;;  %v523_v29 = vld [vmem:[#allocation2 + $0xdf0] sm:$0xff] }
 0x143   :  { %3181 = vmatpush2.bf16.msra.mxu0 %v4316_v45  ;;  %v4653_v34 = vcombine.high %v519_v28, %v523_v29  ;;  %v383_v37 = vld [vmem:[#allocation2 + $0x990] sm:$0xff]  ;;  %v4652_v42 = vcombine.low %v519_v28, %v523_v29 }
 0x144   :  { %3182 = vmatprep.subr.bf16.mxu0 %v4309_v47  ;;  %v515_v40 = vld [vmem:[#allocation2 + $0xdb0] sm:$0xff]  ;;  %v4517_v44 = vcombine.high %v383_v37, %v387_v38  ;;  %v4516_v50 = vcombine.low %v383_v37, %v387_v38 }
 0x145   :  { %3222 = vmatpush2.bf16.msra.mxu1 %v4444_v21  ;;  %v4645_v45 = vcombine.high %v511_v39, %v515_v40  ;;  %v375_v46 = vld [vmem:[#allocation2 + $0x950] sm:$0xff]  ;;  %v4644_v51 = vcombine.low %v511_v39, %v515_v40 }
 0x146   :  { %3223 = vmatprep.subr.bf16.mxu1 %v4437_v49  ;;  %v379_v21 = vld [vmem:[#allocation2 + $0x970] sm:$0xff] }
 0x147   :  { %3183 = vmatpush2.bf16.msra.mxu0 %v4308_v57  ;;  %v503_v47 = vld [vmem:[#allocation2 + $0xd50] sm:$0xff]  ;;  %v4509_v52 = vcombine.high %v375_v46, %v379_v21  ;;  %v4508_v1 = vcombine.low %v375_v46, %v379_v21  ;;  %v136_v21 = vld [vmem:[#allocation2 + $0x1d8] sm:$0xff] }
 0x148   :  { %3184 = vmatprep.subr.bf16.mxu0 %v4301_v61  ;;  %v507_v48 = vld [vmem:[#allocation2 + $0xd70] sm:$0xff] }
 0x149   :  { %3224 = vmatpush2.bf16.msra.mxu1 %v4436_v60  ;;  %v4637_v57 = vcombine.high %v503_v47, %v507_v48  ;;  %v367_v60 = vld [vmem:[#allocation2 + $0x910] sm:$0xff]  ;;  %v4636_v2 = vcombine.low %v503_v47, %v507_v48  ;;  %v140_v47 = vld [vmem:[#allocation2 + $0x1f8] sm:$0xff] }
 0x14a   :  { %3225 = vmatprep.subr.bf16.mxu1 %v4429_v62  ;;  %v371_v61 = vld [vmem:[#allocation2 + $0x930] sm:$0xff] }
 0x14b   :  { %3185 = vmatpush2.bf16.msra.mxu0 %v4300_v3  ;;  %v495_v62 = vld [vmem:[#allocation2 + $0xd10] sm:$0xff]  ;;  %v4501_v3 = vcombine.high %v367_v60, %v371_v61  ;;  %v4500_v11 = vcombine.low %v367_v60, %v371_v61  ;;  %v128_v61 = vld [vmem:[#allocation2 + $0x198] sm:$0xff] }
 0x14c   :  { %3186 = vmatprep.subr.bf16.mxu0 %v4293_v6  ;;  %v4629_v6 = vcombine.high %v495_v62, %v499_v63  ;;  %v487_v9 = vld [vmem:[#allocation2 + $0xcd0] sm:$0xff] }
 0x14d   :  { %3226 = vmatpush2.bf16.msra.mxu1 %v4428_v4  ;;  %v491_v10 = vld [vmem:[#allocation2 + $0xcf0] sm:$0xff] }
 0x14e   :  { %3227 = vmatprep.subr.bf16.mxu1 %v4421_v7  ;;  %v359_v7 = vld [vmem:[#allocation2 + $0x8d0] sm:$0xff] }
 0x14f   :  { %3187 = vmatpush2.bf16.msra.mxu0 %v4292_v12  ;;  %v4628_v12 = vcombine.low %v495_v62, %v499_v63  ;;  %v355_v17 = vld [vmem:[#allocation2 + $0x8b0] sm:$0xff]  ;;  %v4492_v20 = vcombine.low %v359_v7, %v363_v8  ;;  %v132_v62 = vld [vmem:[#allocation2 + $0x1b8] sm:$0xff] }
 0x150   :  { %3188 = vmatprep.subr.bf16.mxu0 %v4285_v14  ;;  %v4621_v14 = vcombine.high %v487_v9, %v491_v10  ;;  %v479_v25 = vld [vmem:[#allocation2 + $0xc90] sm:$0xff] }
 0x151   :  { %3228 = vmatpush2.bf16.msra.mxu1 %v4420_v13  ;;  %v4493_v13 = vcombine.high %v359_v7, %v363_v8  ;;  %v483_v18 = vld [vmem:[#allocation2 + $0xcb0] sm:$0xff]  ;;  %v120_v7 = vld [vmem:[#allocation2 + $0x158] sm:$0xff] }
 0x152   :  { %3229 = vmatprep.subr.bf16.mxu1 %v4413_v15  ;;  %v351_v15 = vld [vmem:[#allocation2 + $0x890] sm:$0xff]  ;;  %v124_v8 = vld [vmem:[#allocation2 + $0x178] sm:$0xff] }
 0x153   :  { %3189 = vmatpush2.bf16.msra.mxu0 %v4284_v22  ;;  %v4620_v22 = vcombine.low %v487_v9, %v491_v10  ;;  %v347_v26 = vld [vmem:[#allocation2 + $0x870] sm:$0xff]  ;;  %v4484_v29 = vcombine.low %v351_v15, %v355_v17  ;;  %v5138_v10 = vld [vmem:[%s5212_s0 + $0x18] ss:$0 sps:$4 sm:$0xff]   ;;  %s5009_s0 = smov [#allocation10]  }
 0x154   :  { %3190 = vmatprep.subr.bf16.mxu0 %v4277_v24  ;;  %v4613_v24 = vcombine.high %v479_v25, %v483_v18  ;;  %v471_v27 = vld [vmem:[#allocation2 + $0xc50] sm:$0xff]  ;;  %s4190_s24 = sshll.u32 %s5009_s0, 4  ;;  %s4191_s24 = int_to_ptr.vmem [resolvable:$true] %s4190_s24 }
 0x155   :  { %3230 = vmatpush2.bf16.msra.mxu1 %v4412_v23  ;;  %v4485_v23 = vcombine.high %v351_v15, %v355_v17  ;;  %v475_v28 = vld [vmem:[#allocation2 + $0xc70] sm:$0xff]  ;;  %s4972_s25 = scalar_lea.vmem %s4191_s24, 128  ;;  %p4977_p7 = scmp.lt.s32.totalorder %s4191_s24, %s4191_s24 }
 0x156   :  { %3231 = vmatprep.subr.bf16.mxu1 %v4405_v53  ;;  %v343_v53 = vld [vmem:[#allocation2 + $0x850] sm:$0xff]  ;;  %p4973_p6 = scmp.ne.s32.totalorder %s4191_s24, %s4972_s25  ;;  %p4978_p8 = scmp.lt.s32.totalorder %s4972_s25, %s4972_s25 }
 0x157   :  { %3191 = vmatpush2.bf16.msra.mxu0 %v4276_v30  ;;  %v4612_v30 = vcombine.low %v479_v25, %v483_v18  ;;  %v339_v37 = vld [vmem:[#allocation2 + $0x830] sm:$0xff]  ;;  %v4476_v40 = vcombine.low %v343_v53, %v347_v26 }
 0x158   :  { %3242 = vmatprep.subr.bf16.mxu0 %v4525_v33  ;;  %v4605_v33 = vcombine.high %v471_v27, %v475_v28  ;;  %v463_v38 = vld [vmem:[#allocation2 + $0xc10] sm:$0xff]  ;;  %p4979_p9 = por %p4978_p8, %p4977_p7 }
 0x159   :  { %3232 = vmatpush2.bf16.msra.mxu1 %v4404_v31  ;;  %v4477_v31 = vcombine.high %v343_v53, %v347_v26  ;;  %v467_v39 = vld [vmem:[#allocation2 + $0xc30] sm:$0xff] }
 0x15a   :  { %3283 = vmatprep.subr.bf16.mxu1 %v4653_v34  ;;  %3193 = vmatmul.mubr.bf16.vlgmr.msra.gmra.mxu0 %v5074_v16  ;;  %v335_v34 = vld [vmem:[#allocation2 + $0x810] sm:$0xff]  ;;  %p4980_p10 = pnand %p4979_p9, %p4973_p6 }
 0x15b   :  { %3243 = vmatpush1.bf16.msra.mxu0 %v4524_v41  ;;  %3274 = vmatprep.mubr.bf16.mxu0 %v5088_v54  ;;  %v4604_v41 = vcombine.low %v471_v27, %v475_v28  ;;  %v459_v46 = vld [vmem:[#allocation2 + $0xbf0] sm:$0xff]  ;;  %v4468_v48 = vcombine.low %v335_v34, %v339_v37 }
 0x15c   :  { %v5127_v49 = vpop.f32.mrf.mxu1  ;;  %3234 = vmatmul.mubr.bf16.vlgmr.msra.gmra.mxu1 %v5078_v19  ;;  %3244 = vmatprep.subr.bf16.mxu0 %v4517_v44  ;;  %v4597_v44 = vcombine.high %v463_v38, %v467_v39  ;;  %v451_v60 = vld [vmem:[#allocation2 + $0xbb0] sm:$0xff] }
 0x15d   :  { %3284 = vmatpush1.bf16.msra.mxu1 %v4652_v42  ;;  %3315 = vmatprep.mubr.bf16.mxu1 %v5008_v36  ;;  %v4469_v42 = vcombine.high %v335_v34, %v339_v37  ;;  %v431_v25 = vld [vmem:[#allocation2 + $0xb10] sm:$0xff] }
 0x15e   :  { %v5130_v55 = vpop.f32.mrf.mxu1  ;;  %3285 = vmatprep.subr.bf16.mxu1 %v4645_v45  ;;  %v455_v45 = vld [vmem:[#allocation2 + $0xbd0] sm:$0xff] }
 0x15f   :  { %3245 = vmatpush1.bf16.msra.mxu0 %v4516_v50  ;;  %v4596_v50 = vcombine.low %v463_v38, %v467_v39  ;;  %v4588_v63 = vcombine.low %v455_v45, %v459_v46  ;;  %v435_v18 = vld [vmem:[#allocation2 + $0xb30] sm:$0xff]  ;;  %v96_v39 = vld [vmem:[#allocation2 + $0x98] sm:$0xff] }
 0x160   :  { %v2993_v0 = vpop.f32.mrf.mxu1  ;;  %3246 = vmatprep.subr.bf16.mxu0 %v4509_v52  ;;  %v4271_v52 = vcombine.high %v136_v21, %v140_v47  ;;  %v4565_v27 = vcombine.high %v431_v25, %v435_v18  ;;  %v423_v28 = vld [vmem:[#allocation2 + $0xad0] sm:$0xff] }
 0x161   :  { %3286 = vmatpush1.bf16.msra.mxu1 %v4644_v51  ;;  %v4589_v51 = vcombine.high %v455_v45, %v459_v46  ;;  %v4270_v0 = vcombine.low %v136_v21, %v140_v47  ;;  %v415_v37 = vld [vmem:[#allocation2 + $0xa90] sm:$0xff]  ;;  %v88_v47 = vld [vmem:[#allocation2 + $0x58] sm:$0xff] }
 0x162   :  { %v2994_v4 = vpop.f32.mrf.mxu1  ;;  %3287 = vmatprep.subr.bf16.mxu1 %v4637_v57  ;;  %v447_v57 = vld [vmem:[#allocation2 + $0xb90] sm:$0xff] }
 0x163   :  { %3247 = vmatpush1.bf16.msra.mxu0 %v4508_v1  ;;  %v4581_v1 = vcombine.high %v447_v57, %v451_v60  ;;  %v443_v4 = vld [vmem:[#allocation2 + $0xb70] sm:$0xff] }
 0x164   :  { %3248 = vmatprep.subr.bf16.mxu0 %v4501_v3  ;;  %v439_v3 = vld [vmem:[#allocation2 + $0xb50] sm:$0xff] }
 0x165   :  { %3288 = vmatpush1.bf16.msra.mxu1 %v4636_v2  ;;  %v4263_v2 = vcombine.high %v128_v61, %v132_v62  ;;  %v4572_v53 = vcombine.low %v439_v3, %v443_v4  ;;  %v419_v38 = vld [vmem:[#allocation2 + $0xab0] sm:$0xff] }
 0x166   :  { %3289 = vmatprep.subr.bf16.mxu1 %v4629_v6  ;;  %v407_v46 = vld [vmem:[#allocation2 + $0xa50] sm:$0xff] }
 0x167   :  { %3249 = vmatpush1.bf16.msra.mxu0 %v4500_v11  ;;  %v4580_v11 = vcombine.low %v447_v57, %v451_v60  ;;  %v411_v21 = vld [vmem:[#allocation2 + $0xa70] sm:$0xff] }
 0x168   :  { %3250 = vmatprep.subr.bf16.mxu0 %v4493_v13  ;;  %v4262_v13 = vcombine.low %v128_v61, %v132_v62  ;;  %v399_v60 = vld [vmem:[#allocation2 + $0xa10] sm:$0xff]  ;;  %v80_v62 = vld [vmem:[#allocation2 + $0x18] sm:$0xff] }
 0x169   :  { %3290 = vmatpush1.bf16.msra.mxu1 %v4628_v12  ;;  %v403_v61 = vld [vmem:[#allocation2 + $0xa30] sm:$0xff] }
 0x16a   :  { %3291 = vmatprep.subr.bf16.mxu1 %v4621_v14  ;;  %v4573_v14 = vcombine.high %v439_v3, %v443_v4  ;;  %v264_v4 = vld [vmem:[#allocation2 + $0x5d8] sm:$0xff] }
 0x16b   :  { %3251 = vmatpush1.bf16.msra.mxu0 %v4492_v20 }
 0x16c   :  { %3252 = vmatprep.subr.bf16.mxu0 %v4485_v23  ;;  %v116_v23 = vld [vmem:[#allocation2 + $0x138] sm:$0xff] }
 0x16d   :  { %3292 = vmatpush1.bf16.msra.mxu1 %v4620_v22  ;;  %v112_v22 = vld [vmem:[#allocation2 + $0x118] sm:$0xff] }
 0x16e   :  { %3293 = vmatprep.subr.bf16.mxu1 %v4613_v24 }
 0x16f   :  { %3253 = vmatpush1.bf16.msra.mxu0 %v4484_v29  ;;  %v427_v29 = vld [vmem:[#allocation2 + $0xaf0] sm:$0xff] }
 0x170   :  { %3254 = vmatprep.subr.bf16.mxu0 %v4477_v31  ;;  %v108_v31 = vld [vmem:[#allocation2 + $0xf8] sm:$0xff] }
 0x171   :  { %3294 = vmatpush1.bf16.msra.mxu1 %v4612_v30  ;;  %v104_v30 = vld [vmem:[#allocation2 + $0xd8] sm:$0xff] }
 0x172   :  { %3295 = vmatprep.subr.bf16.mxu1 %v4605_v33  ;;  %v4246_v33 = vcombine.low %v112_v22, %v116_v23  ;;  %v4239_v34 = vcombine.high %v104_v30, %v108_v31 }
 0x173   :  { %3255 = vmatpush1.bf16.msra.mxu0 %v4476_v40  ;;  %v100_v40 = vld [vmem:[#allocation2 + $0xb8] sm:$0xff] }
 0x174   :  { %3256 = vmatprep.subr.bf16.mxu0 %v4469_v42  ;;  %v4238_v42 = vcombine.low %v104_v30, %v108_v31  ;;  %v4231_v45 = vcombine.high %v96_v39, %v100_v40 }
 0x175   :  { %3296 = vmatpush1.bf16.msra.mxu1 %v4604_v41  ;;  %v4556_v41 = vcombine.low %v423_v28, %v427_v29 }
 0x176   :  { %3297 = vmatprep.subr.bf16.mxu1 %v4597_v44  ;;  %v4549_v44 = vcombine.high %v415_v37, %v419_v38 }
 0x177   :  { %3257 = vmatpush1.bf16.msra.mxu0 %v4468_v48  ;;  %v92_v48 = vld [vmem:[#allocation2 + $0x78] sm:$0xff] }
 0x178   :  { %3258 = vmatprep.subr.bf16.mxu0 %v4589_v51  ;;  %v4230_v51 = vcombine.low %v96_v39, %v100_v40  ;;  %v4223_v57 = vcombine.high %v88_v47, %v92_v48 }
 0x179   :  { %3298 = vmatpush1.bf16.msra.mxu1 %v4596_v50  ;;  %v4548_v50 = vcombine.low %v415_v37, %v419_v38  ;;  %v180_v37 = vld [vmem:[#allocation2 + $0x338] sm:$0xff] }
 0x17a   :  { %3324 = vmatprep.subr.bf16.mxu1 %v4271_v52  ;;  %v2948_v6 = vpop.f32.mrf.mxu0  ;;  %v4541_v52 = vcombine.high %v407_v46, %v411_v21 }
 0x17b   :  { %v2949_v9 = vadd.f32 %v2948_v6, %v5122_v32  ;;  %3259 = vmatpush2.bf16.msra.mxu0 %v4588_v63  ;;  %v4255_v32 = vcombine.high %v120_v7, %v124_v8  ;;  %v84_v63 = vld [vmem:[#allocation2 + $0x38] sm:$0xff] }
 0x17c   :  { %3316 = vmatmul.mubr.bf16.vlgmr.msra.gmra.mxu1 %v5138_v10  ;;  %v2950_v12 = vpop.f32.mrf.mxu0  ;;  %3260 = vmatprep.subr.bf16.mxu0 %v4581_v1  ;;  %v4222_v1 = vcombine.low %v88_v47, %v92_v48  ;;  %v4215_v3 = vcombine.high %v80_v62, %v84_v63  ;;  %v268_v6 = vld [vmem:[#allocation2 + $0x5f8] sm:$0xff] }
 0x17d   :  { %3325 = vmatpush1.bf16.msra.mxu1 %v4270_v0  ;;  %v5142_v15 = vadd.f32 %v5127_v49, %v2949_v9  ;;  %v2951_v17 = vadd.f32 %v2950_v12, %v5124_v43  ;;  %3356 = vmatprep.mubr.bf16.mxu1 %v5064_v58  ;;  %v4254_v49 = vcombine.low %v120_v7, %v124_v8  ;;  %v200_v7 = vld [vmem:[#allocation2 + $0x3d8] sm:$0xff] }
 0x17e   :  { %3326 = vmatprep.subr.bf16.mxu1 %v4263_v2  ;;  %v2952_v20 = vpop.f32.mrf.mxu0  ;;  %v4247_v43 = vcombine.high %v112_v22, %v116_v23  ;;  %v4564_v58 = vcombine.low %v431_v25, %v435_v18  ;;  %v4540_v0 = vcombine.low %v407_v46, %v411_v21  ;;  %v4533_v2 = vcombine.high %v399_v60, %v403_v61  ;;  %v204_v8 = vld [vmem:[#allocation2 + $0x3f8] sm:$0xff] }
 0x17f   :  { %v5147_v24 = vadd.f32 %v5130_v55, %v2951_v17  ;;  %3261 = vmatpush2.bf16.msra.mxu0 %v4580_v11  ;;  %v4557_v55 = vcombine.high %v423_v28, %v427_v29  ;;  %v4532_v9 = vcombine.low %v399_v60, %v403_v61  ;;  %v4214_v11 = vcombine.low %v80_v62, %v84_v63  ;;  %v260_v17 = vld [vmem:[#allocation2 + $0x5b8] sm:$0xff] }
 0x180   :  { %v2953_v26 = vpop.f32.mrf.mxu0  ;;  %3262 = vmatprep.subr.bf16.mxu0 %v4573_v14  ;;  %v4399_v12 = vcombine.high %v264_v4, %v268_v6  ;;  %v256_v14 = vld [vmem:[#allocation2 + $0x598] sm:$0xff]  ;;  %v4398_v18 = vcombine.low %v264_v4, %v268_v6  ;;  %v4334_v20 = vcombine.low %v200_v7, %v204_v8 }
 0x181   :  { %3327 = vmatpush1.bf16.msra.mxu1 %v4262_v13  ;;  %v4335_v13 = vcombine.high %v200_v7, %v204_v8  ;;  %v196_v25 = vld [vmem:[#allocation2 + $0x3b8] sm:$0xff]  ;;  %v4391_v22 = vcombine.high %v256_v14, %v260_v17  ;;  %v4390_v28 = vcombine.low %v256_v14, %v260_v17 }
 0x182   :  { %3328 = vmatprep.subr.bf16.mxu1 %v4255_v32  ;;  %v192_v32 = vld [vmem:[#allocation2 + $0x398] sm:$0xff] }
 0x183   :  { %3263 = vmatpush2.bf16.msra.mxu0 %v4572_v53  ;;  %v4327_v23 = vcombine.high %v192_v32, %v196_v25  ;;  %v248_v53 = vld [vmem:[#allocation2 + $0x558] sm:$0xff]  ;;  %v4326_v29 = vcombine.low %v192_v32, %v196_v25 }
 0x184   :  { %3264 = vmatprep.subr.bf16.mxu0 %v4565_v27  ;;  %v252_v26 = vld [vmem:[#allocation2 + $0x578] sm:$0xff] }
 0x185   :  { %3329 = vmatpush1.bf16.msra.mxu1 %v4254_v49  ;;  %v184_v49 = vld [vmem:[#allocation2 + $0x358] sm:$0xff]  ;;  %v4383_v30 = vcombine.high %v248_v53, %v252_v26  ;;  %v4382_v39 = vcombine.low %v248_v53, %v252_v26 }
 0x186   :  { %3330 = vmatprep.subr.bf16.mxu1 %v4247_v43  ;;  %v188_v27 = vld [vmem:[#allocation2 + $0x378] sm:$0xff] }
 0x187   :  { %3265 = vmatpush2.bf16.msra.mxu0 %v4564_v58  ;;  %v4319_v58 = vcombine.high %v184_v49, %v188_v27  ;;  %v4318_v40 = vcombine.low %v184_v49, %v188_v27  ;;  %v168_v46 = vld [vmem:[#allocation2 + $0x2d8] sm:$0xff] }
 0x188   :  { %3266 = vmatprep.subr.bf16.mxu0 %v4557_v55  ;;  %v244_v55 = vld [vmem:[#allocation2 + $0x538] sm:$0xff] }
 0x189   :  { %3331 = vmatpush1.bf16.msra.mxu1 %v4246_v33  ;;  %v240_v33 = vld [vmem:[#allocation2 + $0x518] sm:$0xff] }
 0x18a   :  { %3332 = vmatprep.subr.bf16.mxu1 %v4239_v34  ;;  %v176_v34 = vld [vmem:[#allocation2 + $0x318] sm:$0xff]  ;;  %v4374_v47 = vcombine.low %v240_v33, %v244_v55 }
 0x18b   :  { %3267 = vmatpush2.bf16.msra.mxu0 %v4556_v41  ;;  %v4375_v41 = vcombine.high %v240_v33, %v244_v55  ;;  %v172_v21 = vld [vmem:[#allocation2 + $0x2f8] sm:$0xff]  ;;  %v4310_v48 = vcombine.low %v176_v34, %v180_v37 }
 0x18c   :  { %3268 = vmatprep.subr.bf16.mxu0 %v4549_v44  ;;  %v232_v44 = vld [vmem:[#allocation2 + $0x4d8] sm:$0xff]  ;;  %v4302_v63 = vcombine.low %v168_v46, %v172_v21 }
 0x18d   :  { %3333 = vmatpush1.bf16.msra.mxu1 %v4238_v42  ;;  %v4311_v42 = vcombine.high %v176_v34, %v180_v37  ;;  %v160_v60 = vld [vmem:[#allocation2 + $0x298] sm:$0xff] }
 0x18e   :  { %3334 = vmatprep.subr.bf16.mxu1 %v4231_v45  ;;  %v236_v45 = vld [vmem:[#allocation2 + $0x4f8] sm:$0xff] }
 0x18f   :  { %3269 = vmatpush2.bf16.msra.mxu0 %v4548_v50  ;;  %v4367_v50 = vcombine.high %v232_v44, %v236_v45  ;;  %v164_v61 = vld [vmem:[#allocation2 + $0x2b8] sm:$0xff]  ;;  %v4366_v62 = vcombine.low %v232_v44, %v236_v45 }
 0x190   :  { %3270 = vmatprep.subr.bf16.mxu0 %v4541_v52  ;;  %v224_v52 = vld [vmem:[#allocation2 + $0x498] sm:$0xff]  ;;  %v4294_v8 = vcombine.low %v160_v60, %v164_v61 }
 0x191   :  { %3335 = vmatpush1.bf16.msra.mxu1 %v4230_v51  ;;  %v4303_v51 = vcombine.high %v168_v46, %v172_v21  ;;  %v152_v4 = vld [vmem:[#allocation2 + $0x258] sm:$0xff] }
 0x192   :  { %3336 = vmatprep.subr.bf16.mxu1 %v4223_v57  ;;  %v228_v57 = vld [vmem:[#allocation2 + $0x4b8] sm:$0xff] }
 0x193   :  { %3271 = vmatpush2.bf16.msra.mxu0 %v4540_v0  ;;  %v4359_v0 = vcombine.high %v224_v52, %v228_v57  ;;  %v156_v6 = vld [vmem:[#allocation2 + $0x278] sm:$0xff]  ;;  %v4358_v7 = vcombine.low %v224_v52, %v228_v57 }
 0x194   :  { %3272 = vmatprep.subr.bf16.mxu0 %v4533_v2  ;;  %v216_v2 = vld [vmem:[#allocation2 + $0x458] sm:$0xff]  ;;  %v4286_v25 = vcombine.low %v152_v4, %v156_v6 }
 0x195   :  { %3337 = vmatpush1.bf16.msra.mxu1 %v4222_v1  ;;  %v4295_v1 = vcombine.high %v160_v60, %v164_v61  ;;  %v144_v14 = vld [vmem:[#allocation2 + $0x218] sm:$0xff] }
 0x196   :  { %3338 = vmatprep.subr.bf16.mxu1 %v4215_v3  ;;  %v220_v3 = vld [vmem:[#allocation2 + $0x478] sm:$0xff] }
 0x197   :  { %3273 = vmatpush2.bf16.msra.mxu0 %v4532_v9  ;;  %v4351_v9 = vcombine.high %v216_v2, %v220_v3  ;;  %v148_v17 = vld [vmem:[#allocation2 + $0x238] sm:$0xff]  ;;  %v4350_v32 = vcombine.low %v216_v2, %v220_v3 }
 0x198   :  { %3365 = vmatprep.subr.bf16.mxu0 %v4399_v12  ;;  %v208_v12 = vld [vmem:[#allocation2 + $0x418] sm:$0xff] }
 0x199   :  { %3339 = vmatpush1.bf16.msra.mxu1 %v4214_v11  ;;  %v4287_v11 = vcombine.high %v152_v4, %v156_v6  ;;  %v332_v53 = vld [vmem:[#allocation2 + $0x7f8] sm:$0xff] }
 0x19a   :  { %3340 = vmatprep.subr.bf16.mxu1 %v4335_v13  ;;  %3275 = vmatmul.mubr.bf16.vlgmr.msra.gmra.mxu0 %v5102_v35  ;;  %v212_v13 = vld [vmem:[#allocation2 + $0x438] sm:$0xff] }
 0x19b   :  { %3366 = vmatpush1.bf16.msra.mxu0 %v4398_v18  ;;  %3397 = vmatprep.mubr.bf16.mxu0 %v5068_v59  ;;  %v4343_v18 = vcombine.high %v208_v12, %v212_v13  ;;  %v392_v26 = vld [vmem:[#allocation2 + $0x9d8] sm:$0xff]  ;;  %v4342_v27 = vcombine.low %v208_v12, %v212_v13 }
 0x19c   :  { %v5150_v43 = vpop.f32.mrf.mxu1  ;;  %3367 = vmatprep.subr.bf16.mxu0 %v4391_v22  ;;  %v4279_v22 = vcombine.high %v144_v14, %v148_v17  ;;  %v396_v49 = vld [vmem:[#allocation2 + $0x9f8] sm:$0xff] }
 0x19d   :  { %3341 = vmatpush2.bf16.msra.mxu1 %v4334_v20  ;;  %v537_v20 = vsub.s32 2, %v5114_v56  ;;  %v320_v33 = vld [vmem:[#allocation2 + $0x798] sm:$0xff] }
 0x19e   :  { %v5153_v31 = vpop.f32.mrf.mxu1  ;;  %3342 = vmatprep.subr.bf16.mxu1 %v4327_v23  ;;  %v328_v23 = vld [vmem:[#allocation2 + $0x7d8] sm:$0xff] }
 0x19f   :  { %3368 = vmatpush1.bf16.msra.mxu0 %v4390_v28  ;;  %v4278_v28 = vcombine.low %v144_v14, %v148_v17  ;;  %v324_v55 = vld [vmem:[#allocation2 + $0x7b8] sm:$0xff] }
 0x1a0   :  { %v3034_v38 = vpop.f32.mrf.mxu1  ;;  %3369 = vmatprep.subr.bf16.mxu0 %v4383_v30  ;;  %v538_v30 = vrot.slane %v5117_v5, %v537_v20  ;;  %v384_v34 = vld [vmem:[#allocation2 + $0x998] sm:$0xff] }
 0x1a1   :  { %3343 = vmatpush2.bf16.msra.mxu1 %v4326_v29  ;;  %v4463_v29 = vcombine.high %v328_v23, %v332_v53  ;;  %v388_v37 = vld [vmem:[#allocation2 + $0x9b8] sm:$0xff]  ;;  %v4462_v38 = vcombine.low %v328_v23, %v332_v53 }
 0x1a2   :  { %v3035_v59 = vpop.f32.mrf.mxu1  ;;  %3344 = vmatprep.subr.bf16.mxu1 %v4319_v58  ;;  %v4527_v58 = vcombine.high %v392_v26, %v396_v49  ;;  %v316_v44 = vld [vmem:[#allocation2 + $0x778] sm:$0xff] }
 0x1a3   :  { %3370 = vmatpush1.bf16.msra.mxu0 %v4382_v39  ;;  %v4526_v39 = vcombine.low %v392_v26, %v396_v49  ;;  %v4519_v59 = vcombine.high %v384_v34, %v388_v37  ;;  %v376_v5 = vld [vmem:[#allocation2 + $0x958] sm:$0xff] }
 0x1a4   :  { %3371 = vmatprep.subr.bf16.mxu0 %v4375_v41  ;;  %v3031_v41 = vadd.f32 %v5150_v43, %v538_v30  ;;  %v380_v46 = vld [vmem:[#allocation2 + $0x978] sm:$0xff] }
 0x1a5   :  { %3345 = vmatpush2.bf16.msra.mxu1 %v4318_v40  ;;  %v4455_v40 = vcombine.high %v320_v33, %v324_v55  ;;  %v4511_v43 = vcombine.high %v376_v5, %v380_v46  ;;  %v304_v52 = vld [vmem:[#allocation2 + $0x718] sm:$0xff] }
 0x1a6   :  { %3346 = vmatprep.subr.bf16.mxu1 %v4311_v42  ;;  %v312_v42 = vld [vmem:[#allocation2 + $0x758] sm:$0xff] }
 0x1a7   :  { %3372 = vmatpush1.bf16.msra.mxu0 %v4374_v47  ;;  %v4454_v47 = vcombine.low %v320_v33, %v324_v55  ;;  %v308_v57 = vld [vmem:[#allocation2 + $0x738] sm:$0xff] }
 0x1a8   :  { %3373 = vmatprep.subr.bf16.mxu0 %v4367_v50  ;;  %v4518_v50 = vcombine.low %v384_v34, %v388_v37  ;;  %v368_v61 = vld [vmem:[#allocation2 + $0x918] sm:$0xff] }
 0x1a9   :  { %3347 = vmatpush2.bf16.msra.mxu1 %v4310_v48  ;;  %v296_v3 = vld [vmem:[#allocation2 + $0x6d8] sm:$0xff] }
 0x1aa   :  { %3348 = vmatprep.subr.bf16.mxu1 %v4303_v51  ;;  %v4447_v51 = vcombine.high %v312_v42, %v316_v44  ;;  %v300_v4 = vld [vmem:[#allocation2 + $0x6f8] sm:$0xff] }
 0x1ab   :  { %3374 = vmatpush1.bf16.msra.mxu0 %v4366_v62  ;;  %v372_v62 = vld [vmem:[#allocation2 + $0x938] sm:$0xff] }
 0x1ac   :  { %3375 = vmatprep.subr.bf16.mxu0 %v4359_v0  ;;  %v4510_v0 = vcombine.low %v376_v5, %v380_v46  ;;  %v4503_v2 = vcombine.high %v368_v61, %v372_v62  ;;  %v360_v6 = vld [vmem:[#allocation2 + $0x8d8] sm:$0xff] }
 0x1ad   :  { %3349 = vmatpush2.bf16.msra.mxu1 %v4302_v63  ;;  %v4446_v63 = vcombine.low %v312_v42, %v316_v44  ;;  %v288_v12 = vld [vmem:[#allocation2 + $0x698] sm:$0xff] }
 0x1ae   :  { %3350 = vmatprep.subr.bf16.mxu1 %v4295_v1  ;;  %v4439_v1 = vcombine.high %v304_v52, %v308_v57  ;;  %v292_v13 = vld [vmem:[#allocation2 + $0x6b8] sm:$0xff] }
 0x1af   :  { %3376 = vmatpush1.bf16.msra.mxu0 %v4358_v7  ;;  %v364_v7 = vld [vmem:[#allocation2 + $0x8f8] sm:$0xff]  ;;  %v4422_v49 = vcombine.low %v288_v12, %v292_v13 }
 0x1b0   :  { %3377 = vmatprep.subr.bf16.mxu0 %v4351_v9  ;;  %v4431_v9 = vcombine.high %v296_v3, %v300_v4  ;;  %v352_v14 = vld [vmem:[#allocation2 + $0x898] sm:$0xff] }
 0x1b1   :  { %3351 = vmatpush2.bf16.msra.mxu1 %v4294_v8  ;;  %v4438_v8 = vcombine.low %v304_v52, %v308_v57  ;;  %v356_v17 = vld [vmem:[#allocation2 + $0x8b8] sm:$0xff] }
 0x1b2   :  { %3352 = vmatprep.subr.bf16.mxu1 %v4287_v11  ;;  %v4495_v11 = vcombine.high %v360_v6, %v364_v7  ;;  %v4487_v20 = vcombine.high %v352_v14, %v356_v17  ;;  %v284_v23 = vld [vmem:[#allocation2 + $0x678] sm:$0xff] }
 0x1b3   :  { %3378 = vmatpush1.bf16.msra.mxu0 %v4350_v32  ;;  %v4430_v32 = vcombine.low %v296_v3, %v300_v4  ;;  %v344_v53 = vld [vmem:[#allocation2 + $0x858] sm:$0xff] }
 0x1b4   :  { %3379 = vmatprep.subr.bf16.mxu0 %v4343_v18  ;;  %v4423_v18 = vcombine.high %v288_v12, %v292_v13  ;;  %v348_v26 = vld [vmem:[#allocation2 + $0x878] sm:$0xff] }
 0x1b5   :  { %3353 = vmatpush2.bf16.msra.mxu1 %v4286_v25  ;;  %v4494_v25 = vcombine.low %v360_v6, %v364_v7  ;;  %v272_v30 = vld [vmem:[#allocation2 + $0x618] sm:$0xff]  ;;  %v4478_v37 = vcombine.low %v344_v53, %v348_v26 }
 0x1b6   :  { %3354 = vmatprep.subr.bf16.mxu1 %v4279_v22  ;;  %v280_v22 = vld [vmem:[#allocation2 + $0x658] sm:$0xff] }
 0x1b7   :  { %3380 = vmatpush1.bf16.msra.mxu0 %v4342_v27  ;;  %v4486_v27 = vcombine.low %v352_v14, %v356_v17  ;;  %v336_v33 = vld [vmem:[#allocation2 + $0x818] sm:$0xff]  ;;  %v4414_v34 = vcombine.low %v280_v22, %v284_v23 }
 0x1b8   :  { %3381 = vmatprep.subr.bf16.mxu0 %v4463_v29  ;;  %v4479_v29 = vcombine.high %v344_v53, %v348_v26  ;;  %v340_v55 = vld [vmem:[#allocation2 + $0x838] sm:$0xff] }
 0x1b9   :  { %3355 = vmatpush2.bf16.msra.mxu1 %v4278_v28  ;;  %v4415_v28 = vcombine.high %v280_v22, %v284_v23  ;;  %v460_v42 = vld [vmem:[#allocation2 + $0xbf8] sm:$0xff] }
 0x1ba   :  { %3406 = vmatprep.subr.bf16.mxu1 %v4527_v58  ;;  %v3071_v45 = vpop.f32.mrf.mxu0  ;;  %v276_v58 = vld [vmem:[#allocation2 + $0x638] sm:$0xff] }
 0x1bb   :  { %v5158_v21 = vadd.f32 %v3071_v45, %v3031_v41  ;;  %3382 = vmatpush2.bf16.msra.mxu0 %v4462_v38  ;;  %v4407_v38 = vcombine.high %v272_v30, %v276_v58  ;;  %v524_v41 = vld [vmem:[#allocation2 + $0xdf8] sm:$0xff]  ;;  %v4406_v44 = vcombine.low %v272_v30, %v276_v58  ;;  %v4470_v45 = vcombine.low %v336_v33, %v340_v55 }
 0x1bc   :  { %3357 = vmatmul.mubr.bf16.vlgmr.msra.gmra.mxu1 %v5074_v16  ;;  %v5161_v48 = vpop.f32.mrf.mxu0  ;;  %3383 = vmatprep.subr.bf16.mxu0 %v4455_v40  ;;  %v520_v40 = vld [vmem:[#allocation2 + $0xdd8] sm:$0xff] }
 0x1bd   :  { %3407 = vmatpush1.bf16.msra.mxu1 %v4526_v39  ;;  %3438 = vmatprep.mubr.bf16.mxu1 %v5088_v54  ;;  %v4502_v54 = vcombine.low %v368_v61, %v372_v62  ;;  %v4471_v39 = vcombine.high %v336_v33, %v340_v55  ;;  %v4655_v5 = vcombine.high %v520_v40, %v524_v41  ;;  %v504_v62 = vld [vmem:[#allocation2 + $0xd58] sm:$0xff] }
 0x1be   :  { %3408 = vmatprep.subr.bf16.mxu1 %v4519_v59  ;;  %v3075_v60 = vpop.f32.mrf.mxu0  ;;  %v456_v59 = vld [vmem:[#allocation2 + $0xbd8] sm:$0xff]  ;;  %v4654_v52 = vcombine.low %v520_v40, %v524_v41 }
 0x1bf   :  { %3384 = vmatpush2.bf16.msra.mxu0 %v4454_v47  ;;  %v4591_v46 = vcombine.high %v456_v59, %v460_v42  ;;  %v512_v47 = vld [vmem:[#allocation2 + $0xd98] sm:$0xff]  ;;  %v4590_v57 = vcombine.low %v456_v59, %v460_v42 }
 0x1c0   :  { %v3076_v16 = vpop.f32.mrf.mxu0  ;;  %3385 = vmatprep.subr.bf16.mxu0 %v4447_v51  ;;  %v448_v51 = vld [vmem:[#allocation2 + $0xb98] sm:$0xff] }
 0x1c1   :  { %3409 = vmatpush1.bf16.msra.mxu1 %v4518_v50  ;;  %v516_v50 = vld [vmem:[#allocation2 + $0xdb8] sm:$0xff] }
 0x1c2   :  { %3410 = vmatprep.subr.bf16.mxu1 %v4511_v43  ;;  %v452_v43 = vld [vmem:[#allocation2 + $0xbb8] sm:$0xff]  ;;  %v4647_v60 = vcombine.high %v512_v47, %v516_v50  ;;  %v4646_v3 = vcombine.low %v512_v47, %v516_v50 }
 0x1c3   :  { %3386 = vmatpush2.bf16.msra.mxu0 %v4446_v63  ;;  %v4583_v61 = vcombine.high %v448_v51, %v452_v43  ;;  %v508_v63 = vld [vmem:[#allocation2 + $0xd78] sm:$0xff]  ;;  %v4582_v6 = vcombine.low %v448_v51, %v452_v43 }
 0x1c4   :  { %3387 = vmatprep.subr.bf16.mxu0 %v4439_v1  ;;  %v444_v1 = vld [vmem:[#allocation2 + $0xb78] sm:$0xff]  ;;  %v4639_v7 = vcombine.high %v504_v62, %v508_v63  ;;  %v4638_v17 = vcombine.low %v504_v62, %v508_v63 }
 0x1c5   :  { %3411 = vmatpush1.bf16.msra.mxu1 %v4510_v0  ;;  %v440_v0 = vld [vmem:[#allocation2 + $0xb58] sm:$0xff] }
 0x1c6   :  { %3412 = vmatprep.subr.bf16.mxu1 %v4503_v2  ;;  %v432_v12 = vld [vmem:[#allocation2 + $0xb18] sm:$0xff] }
 0x1c7   :  { %3388 = vmatpush2.bf16.msra.mxu0 %v4438_v8  ;;  %v436_v13 = vld [vmem:[#allocation2 + $0xb38] sm:$0xff] }
 0x1c8   :  { %3389 = vmatprep.subr.bf16.mxu0 %v4431_v9  ;;  %v496_v9 = vld [vmem:[#allocation2 + $0xd18] sm:$0xff] }
 0x1c9   :  { %3413 = vmatpush1.bf16.msra.mxu1 %v4502_v54  ;;  %v4575_v54 = vcombine.high %v440_v0, %v444_v1  ;;  %v488_v22 = vld [vmem:[#allocation2 + $0xcd8] sm:$0xff] }
 0x1ca   :  { %3414 = vmatprep.subr.bf16.mxu1 %v4495_v11  ;;  %v492_v23 = vld [vmem:[#allocation2 + $0xcf8] sm:$0xff] }
 0x1cb   :  { %3390 = vmatpush2.bf16.msra.mxu0 %v4430_v32  ;;  %v4574_v32 = vcombine.low %v440_v0, %v444_v1  ;;  %v424_v53 = vld [vmem:[#allocation2 + $0xad8] sm:$0xff] }
 0x1cc   :  { %3391 = vmatprep.subr.bf16.mxu0 %v4423_v18  ;;  %v428_v26 = vld [vmem:[#allocation2 + $0xaf8] sm:$0xff] }
 0x1cd   :  { %3415 = vmatpush1.bf16.msra.mxu1 %v4494_v25  ;;  %v4559_v30 = vcombine.high %v424_v53, %v428_v26  ;;  %v480_v58 = vld [vmem:[#allocation2 + $0xc98] sm:$0xff]  ;;  %v4558_v40 = vcombine.low %v424_v53, %v428_v26  ;;  %v4842_v53 = vld [vmem:[#allocation7 + $0x58] sm:$0xff]  }
 0x1ce   :  { %3416 = vmatprep.subr.bf16.mxu1 %v4487_v20  ;;  %v4567_v20 = vcombine.high %v432_v12, %v436_v13  ;;  %v484_v33 = vld [vmem:[#allocation2 + $0xcb8] sm:$0xff]  ;;  %v4843_v26 = vld [vmem:[#allocation7 + $0xd8] sm:$0xff]  }
 0x1cf   :  { %3392 = vmatpush2.bf16.msra.mxu0 %v4422_v49  ;;  %v541_v49 = vsub.s32 3, %v5114_v56  ;;  %v416_v55 = vld [vmem:[#allocation2 + $0xa98] sm:$0xff]  ;;  %v4615_v41 = vcombine.high %v480_v58, %v484_v33  ;;  %v4614_v47 = vcombine.low %v480_v58, %v484_v33  ;;  %v4850_v33 = vld [vmem:[#allocation7 + $0x48] sm:$0xff]  }
 0x1d0   :  { %3393 = vmatprep.subr.bf16.mxu0 %v4415_v28  ;;  %v4566_v28 = vcombine.low %v432_v12, %v436_v13  ;;  %v472_v42 = vld [vmem:[#allocation2 + $0xc58] sm:$0xff]  ;;  %v4829_v12 = vld [vmem:[#allocation7 + $0xb8] sm:$0xff]  }
 0x1d1   :  { %3417 = vmatpush1.bf16.msra.mxu1 %v4486_v27  ;;  %v404_v62 = vld [vmem:[#allocation2 + $0xa38] sm:$0xff] }
 0x1d2   :  { %3418 = vmatprep.subr.bf16.mxu1 %v4479_v29  ;;  %v4623_v29 = vcombine.high %v488_v22, %v492_v23  ;;  %v4830_v13 = vld [vmem:[#allocation7 + $0x70] sm:$0xff]  }
 0x1d3   :  { %3394 = vmatpush2.bf16.msra.mxu0 %v4414_v34  ;;  %v420_v34 = vld [vmem:[#allocation2 + $0xab8] sm:$0xff] }
 0x1d4   :  { %3395 = vmatprep.subr.bf16.mxu0 %v4407_v38  ;;  %v4551_v59 = vcombine.high %v416_v55, %v420_v34  ;;  %v4550_v50 = vcombine.low %v416_v55, %v420_v34  ;;  %v4849_v58 = vld [vmem:[#allocation7 + $0x90] sm:$0xff]   ;;  %v4851_v34 = vld [vmem:[#allocation7 + $0xc8] sm:$0xff]  }
 0x1d5   :  { %3419 = vmatpush1.bf16.msra.mxu1 %v4478_v37  ;;  %v5175_v37 = vld [vmem:[#allocation5] sm:$0xff] }
 0x1d6   :  { %3420 = vmatprep.subr.bf16.mxu1 %v4471_v39  ;;  %v542_v38 = vrot.slane %v5175_v37, %v541_v49  ;;  %v4622_v39 = vcombine.low %v488_v22, %v492_v23  ;;  %v4839_v22 = vld [vmem:[#allocation7 + $0xe0] sm:$0xff]   ;;  %v4844_v49 = vld [vmem:[#allocation7 + $0x18] sm:$0xff]  }
 0x1d7   :  { %3396 = vmatpush2.bf16.msra.mxu0 %v4406_v44  ;;  %v476_v44 = vld [vmem:[#allocation2 + $0xc78] sm:$0xff]  ;;  %v4841_v23 = vld [vmem:[#allocation7 + $0xa0] sm:$0xff]  }
 0x1d8   :  { %3447 = vmatprep.subr.bf16.mxu0 %v4655_v5  ;;  %v412_v5 = vld [vmem:[#allocation2 + $0xa78] sm:$0xff]  ;;  %v4607_v51 = vcombine.high %v472_v42, %v476_v44  ;;  %v4606_v0 = vcombine.low %v472_v42, %v476_v44  ;;  %v4856_v42 = vld [vmem:[#allocation7] sm:$0xff]   ;;  %v3488_v44 = vmax.f32 %v5142_v15, 0.0 }
 0x1d9   :  { %3421 = vmatpush1.bf16.msra.mxu1 %v4470_v45  ;;  %v408_v45 = vld [vmem:[#allocation2 + $0xa58] sm:$0xff] }
 0x1da   :  { %3422 = vmatprep.subr.bf16.mxu1 %v4591_v46  ;;  %v5164_v16 = vpop.f32.mrf.mxu0  ;;  %3398 = vmatmul.mubr.bf16.vlgmr.msra.gmra.mxu0 %v5078_v19  ;;  %v500_v19 = vld [vmem:[#allocation2 + $0xd38] sm:$0xff]  ;;  %v3033_v46 = vadd.f32 %v5153_v31, %v542_v38  ;;  %v4542_v31 = vcombine.low %v408_v45, %v412_v5  ;;  %v4852_v38 = vld [vmem:[#allocation7 + $0x8] sm:$0xff]  }
 0x1db   :  { %3448 = vmatpush1.bf16.msra.mxu0 %v4654_v52  ;;  %3479 = vmatprep.mubr.bf16.mxu0 %v5008_v36  ;;  %v4631_v25 = vcombine.high %v496_v9, %v500_v19  ;;  %v4630_v27 = vcombine.low %v496_v9, %v500_v19  ;;  %v4543_v52 = vcombine.high %v408_v45, %v412_v5  ;;  %v4827_v9 = vld [vmem:[#allocation7 + $0xf8] sm:$0xff]   ;;  %v4857_v45 = vld [vmem:[#allocation7 + $0x80] sm:$0xff]   ;;  %v4861_v15 = vld [vmem:[#allocation7 + $0x130] sm:$0xff]  }
 0x1dc   :  { %v5167_v2 = vpop.f32.mrf.mxu1  ;;  %v5170_v4 = vpop.f32.mrf.mxu0  ;;  %3449 = vmatprep.subr.bf16.mxu0 %v4647_v60  ;;  %v3074_v43 = vadd.f32 %v5161_v48, %v3033_v46  ;;  %v468_v60 = vld [vmem:[#allocation2 + $0xc38] sm:$0xff]  ;;  %v4859_v5 = vld [vmem:[#allocation7 + $0x138] sm:$0xff]   ;;  %v3496_v46 = vpack.c.bf16 %v3488_v44, %v3488_v44 }
 0x1dd   :  { %3423 = vmatpush2.bf16.msra.mxu1 %v4590_v57  ;;  %v464_v57 = vld [vmem:[#allocation2 + $0xc18] sm:$0xff]  ;;  %v3113_v55 = vadd.f32 %v5167_v2, %v5158_v21  ;;  %v4858_v21 = vld [vmem:[#allocation7 + $0x178] sm:$0xff]  }
 0x1de   :  { %v5172_v8 = vpop.f32.mrf.mxu1  ;;  %3424 = vmatprep.subr.bf16.mxu1 %v4583_v61  ;;  %v3157_v11 = vpop.f32.mrf.mxu0  ;;  %v400_v61 = vld [vmem:[#allocation2 + $0xa18] sm:$0xff]  ;;  %v4599_v1 = vcombine.high %v464_v57, %v468_v60  ;;  %v4598_v48 = vcombine.low %v464_v57, %v468_v60 }
 0x1df   :  { %3450 = vmatpush1.bf16.msra.mxu0 %v4646_v3  ;;  %v3115_v63 = vadd.f32 %v5172_v8, %v3074_v43  ;;  %v4535_v3 = vcombine.high %v400_v61, %v404_v62  ;;  %v3489_v8 = vmax.f32 %v5147_v24, 0.0  ;;  %v4828_v11 = vld [vmem:[#allocation7 + $0x38] sm:$0xff]   ;;  %v4833_v24 = vld [vmem:[#allocation7 + $0xb0] sm:$0xff]  }
 0x1e0   :  { %v3116_v14 = vpop.f32.mrf.mxu1  ;;  %v3158_v36 = vpop.f32.mrf.mxu0  ;;  %3451 = vmatprep.subr.bf16.mxu0 %v4639_v7  ;;  %v4534_v7 = vcombine.low %v400_v61, %v404_v62  ;;  %v4863_v62 = vld [vmem:[#allocation7 + $0x128] sm:$0xff]  }
 0x1e1   :  { %3425 = vmatpush2.bf16.msra.mxu1 %v4582_v6  ;;  %v3156_v6 = vadd.f32 %v5170_v4, %v3115_v63  ;;  %v3497_v14 = vpack.c.bf16 %v3489_v8, %v3489_v8  ;;  %v4831_v4 = vld [vmem:[#allocation7 + $0xf0] sm:$0xff]   ;;  %v4864_v63 = vld [vmem:[#allocation7 + $0x160] sm:$0xff]   ;;  %v4867_v8 = vld [vmem:[#allocation7 + $0x118] sm:$0xff]  }
 0x1e2   :  { %v3117_v18 = vpop.f32.mrf.mxu1  ;;  %3426 = vmatprep.subr.bf16.mxu1 %v4575_v54  ;;  %v4826_v54 = vld [vmem:[#allocation7 + $0x78] sm:$0xff]   ;;  %v4832_v36 = vld [vmem:[#allocation7 + $0x30] sm:$0xff]  }
 0x1e3   :  { %3452 = vmatpush1.bf16.msra.mxu0 %v4638_v17  ;;  %v3491_v19 = vmax.f32 %v3156_v6, 0.0  ;;  %v4836_v18 = vld [vmem:[#allocation7 + $0x28] sm:$0xff]  }
 0x1e4   :  { %3453 = vmatprep.subr.bf16.mxu0 %v4631_v25  ;;  %v4835_v25 = vld [vmem:[#allocation7 + $0xe8] sm:$0xff]  }
 0x1e5   :  { %3427 = vmatpush2.bf16.msra.mxu1 %v4574_v32  ;;  %v3499_v17 = vpack.c.bf16 %v3491_v19, %v3491_v19  ;;  %v4834_v32 = vld [vmem:[#allocation7 + $0x68] sm:$0xff]  }
 0x1e6   :  { %3428 = vmatprep.subr.bf16.mxu1 %v4567_v20  ;;  %v4837_v20 = vld [vmem:[#allocation7 + $0xa8] sm:$0xff]  }
 0x1e7   :  { %3454 = vmatpush1.bf16.msra.mxu0 %v4630_v27  ;;  %v4845_v27 = vld [vmem:[#allocation7 + $0x98] sm:$0xff]   ;;  %v4879_v19 = vld [vmem:[#allocation7 + $0x1a8] sm:$0xff]  }
 0x1e8   :  { %3455 = vmatprep.subr.bf16.mxu0 %v4623_v29  ;;  %v4847_v29 = vld [vmem:[#allocation7 + $0xd0] sm:$0xff]  }
 0x1e9   :  { %3429 = vmatpush2.bf16.msra.mxu1 %v4566_v28  ;;  %v4846_v28 = vld [vmem:[#allocation7 + $0x50] sm:$0xff]  }
 0x1ea   :  { %3430 = vmatprep.subr.bf16.mxu1 %v4559_v30  ;;  %v4848_v30 = vld [vmem:[#allocation7 + $0x10] sm:$0xff]  }
 0x1eb   :  { %3456 = vmatpush1.bf16.msra.mxu0 %v4622_v39  ;;  %v4853_v39 = vld [vmem:[#allocation7 + $0x88] sm:$0xff]  }
 0x1ec   :  { %3457 = vmatprep.subr.bf16.mxu0 %v4615_v41  ;;  %v3154_v41 = vadd.f32 %v5164_v16, %v3113_v55 }
 0x1ed   :  { %3431 = vmatpush2.bf16.msra.mxu1 %v4558_v40  ;;  %v4854_v40 = vld [vmem:[#allocation7 + $0x40] sm:$0xff]  }
 0x1ee   :  { %3432 = vmatprep.subr.bf16.mxu1 %v4551_v59  ;;  %v4855_v59 = vld [vmem:[#allocation7 + $0xc0] sm:$0xff]   ;;  %v3490_v2 = vmax.f32 %v3154_v41, 0.0 }
 0x1ef   :  { %3458 = vmatpush1.bf16.msra.mxu0 %v4614_v47  ;;  %v4860_v47 = vld [vmem:[#allocation7 + $0x170] sm:$0xff]  }
 0x1f0   :  { %3459 = vmatprep.subr.bf16.mxu0 %v4607_v51 }
 0x1f1   :  { %3433 = vmatpush2.bf16.msra.mxu1 %v4550_v50  ;;  %v3498_v50 = vpack.c.bf16 %v3490_v2, %v3490_v2 }
 0x1f2   :  { %3434 = vmatprep.subr.bf16.mxu1 %v4543_v52  ;;  %v4862_v52 = vld [vmem:[#allocation7 + $0x168] sm:$0xff]  }
 0x1f3   :  { %3460 = vmatpush1.bf16.msra.mxu0 %v4606_v0 }
 0x1f4   :  { %3461 = vmatprep.subr.bf16.mxu0 %v4599_v1  ;;  %v4875_v1 = vld [vmem:[#allocation7 + $0x1b8] sm:$0xff]  }
 0x1f5   :  { %3435 = vmatpush2.bf16.msra.mxu1 %v4542_v31  ;;  %v4874_v31 = vld [vmem:[#allocation7 + $0x1f8] sm:$0xff]  }
 0x1f6   :  { %3436 = vmatprep.subr.bf16.mxu1 %v4535_v3  ;;  %v4876_v3 = vld [vmem:[#allocation7 + $0x1f0] sm:$0xff]  }
 0x1f7   :  { %3462 = vmatpush1.bf16.msra.mxu0 %v4598_v48  ;;  %v4865_v48 = vld [vmem:[#allocation7 + $0x120] sm:$0xff]  }
 0x1f8   :  { %4721 = vmatprep.subr.bf16.mxu0 %v4826_v54  ;;  %v4866_v54 = vld [vmem:[#allocation7 + $0x158] sm:$0xff]  }
 0x1f9   :  { %3437 = vmatpush2.bf16.msra.mxu1 %v4534_v7  ;;  %v4877_v7 = vld [vmem:[#allocation7 + $0x1b0] sm:$0xff]  }
 0x1fa   :  { %4743 = vmatprep.subr.bf16.mxu1 %v4827_v9  ;;  %3480 = vmatmul.mubr.bf16.vlgmr.msra.gmra.mxu0 %v5138_v10  ;;  %v4838_v10 = vld [vmem:[#allocation7 + $0x60] sm:$0xff]   ;;  %v4878_v9 = vld [vmem:[#allocation7 + $0x1e8] sm:$0xff]  }
 0x1fb   :  { %4722 = vmatpush3.bf16.msra.mxu0 %v4828_v11  ;;  %4055 = vmatprep.mubr.bf16.mxu0 %v3497_v14  ;;  %v4868_v11 = vld [vmem:[#allocation7 + $0x150] sm:$0xff]   ;;  %v4881_v14 = vld [vmem:[#allocation7 + $0x1a0] sm:$0xff]  }
 0x1fc   :  { %3439 = vmatmul.mubr.bf16.vlgmr.msra.gmra.mxu1 %v5102_v35  ;;  %4723 = vmatprep.subr.bf16.mxu0 %v4830_v13  ;;  %v4840_v35 = vld [vmem:[#allocation7 + $0x20] sm:$0xff]   ;;  %v4869_v13 = vld [vmem:[#allocation7 + $0x110] sm:$0xff]  }
 0x1fd   :  { %4744 = vmatpush3.bf16.msra.mxu1 %v4829_v12  ;;  %4095 = vmatprep.mubr.bf16.mxu1 %v3499_v17  ;;  %v4880_v12 = vld [vmem:[#allocation7 + $0x1e0] sm:$0xff]   ;;  %v4882_v17 = vld [vmem:[#allocation7 + $0x1d8] sm:$0xff]  }
 0x1fe   :  { %4745 = vmatprep.subr.bf16.mxu1 %v4831_v4  ;;  %v4870_v4 = vld [vmem:[#allocation7 + $0x148] sm:$0xff]  }
 0x1ff   :  { %4724 = vmatpush3.bf16.msra.mxu0 %v4832_v36  ;;  %v4871_v36 = vld [vmem:[#allocation7 + $0x108] sm:$0xff]  }
 0x200   :  { %4725 = vmatprep.subr.bf16.mxu0 %v4834_v32  ;;  %v4872_v32 = vld [vmem:[#allocation7 + $0x140] sm:$0xff]  }
 0x201   :  { %4746 = vmatpush3.bf16.msra.mxu1 %v4833_v24  ;;  %v4883_v24 = vld [vmem:[#allocation7 + $0x198] sm:$0xff]  }
 0x202   :  { %4747 = vmatprep.subr.bf16.mxu1 %v4835_v25  ;;  %v4873_v25 = vld [vmem:[#allocation7 + $0x100] sm:$0xff]  }
 0x203   :  { %4726 = vmatpush3.bf16.msra.mxu0 %v4836_v18  ;;  %v4884_v18 = vld [vmem:[#allocation7 + $0x1d0] sm:$0xff]  }
 0x204   :  { %4727 = vmatprep.subr.bf16.mxu0 %v4838_v10  ;;  %v4885_v10 = vld [vmem:[#allocation7 + $0x190] sm:$0xff]  }
 0x205   :  { %4748 = vmatpush3.bf16.msra.mxu1 %v4837_v20 }
 0x206   :  { %4749 = vmatprep.subr.bf16.mxu1 %v4839_v22 }
 0x207   :  { %4728 = vmatpush3.bf16.msra.mxu0 %v4840_v35  ;;  %v4886_v35 = vld [vmem:[#allocation7 + $0x1c8] sm:$0xff]  }
 0x208   :  { %4729 = vmatprep.subr.bf16.mxu0 %v4842_v53  ;;  %v4887_v53 = vld [vmem:[#allocation7 + $0x188] sm:$0xff]  }
 0x209   :  { %4750 = vmatpush3.bf16.msra.mxu1 %v4841_v23 }
 0x20a   :  { %4751 = vmatprep.subr.bf16.mxu1 %v4843_v26 }
 0x20b   :  { %4730 = vmatpush3.bf16.msra.mxu0 %v4844_v49  ;;  %v4888_v49 = vld [vmem:[#allocation7 + $0x1c0] sm:$0xff]  }
 0x20c   :  { %4731 = vmatprep.subr.bf16.mxu0 %v4846_v28  ;;  %v545_v28 = vsub.s32 4, %v5114_v56 }
 0x20d   :  { %4752 = vmatpush3.bf16.msra.mxu1 %v4845_v27  ;;  %v4889_v27 = vld [vmem:[#allocation7 + $0x180] sm:$0xff]  }
 0x20e   :  { %4753 = vmatprep.subr.bf16.mxu1 %v4847_v29  ;;  %v549_v29 = vsub.s32 5, %v5114_v56 }
 0x20f   :  { %4732 = vmatpush3.bf16.msra.mxu0 %v4848_v30  ;;  %v546_v30 = vrot.slane %v5175_v37, %v545_v28 }
 0x210   :  { %4733 = vmatprep.subr.bf16.mxu0 %v4850_v33 }
 0x211   :  { %4754 = vmatpush3.bf16.msra.mxu1 %v4849_v58  ;;  %v550_v58 = vrot.slane %v5175_v37, %v549_v29 }
 0x212   :  { %4755 = vmatprep.subr.bf16.mxu1 %v4851_v34 }
 0x213   :  { %4734 = vmatpush3.bf16.msra.mxu0 %v4852_v38 }
 0x214   :  { %4735 = vmatprep.subr.bf16.mxu0 %v4854_v40 }
 0x215   :  { %4756 = vmatpush3.bf16.msra.mxu1 %v4853_v39 }
 0x216   :  { %4757 = vmatprep.subr.bf16.mxu1 %v4855_v59 }
 0x217   :  { %4736 = vmatpush3.bf16.msra.mxu0 %v4856_v42 }
 0x218   :  { %4765 = vmatprep.subr.bf16.mxu0 %v4858_v21 }
 0x219   :  { %4758 = vmatpush3.bf16.msra.mxu1 %v4857_v45 }
 0x21a   :  { %v5189_v16 = vpop.f32.mrf.mxu0  ;;  %4056 = vmatmul.mubr.bf16.vlgmr.msra.gmra.mxu0 %v3496_v46  ;;  %4787 = vmatprep.subr.bf16.mxu1 %v4874_v31 }
 0x21b   :  { %4766 = vmatpush3.bf16.msra.mxu0 %v4859_v5  ;;  %v3195_v33 = vadd.f32 %v5189_v16, %v546_v30 }
 0x21c   :  { %v5191_v51 = vpop.f32.mrf.mxu1  ;;  %4096 = vmatmul.mubr.bf16.vlgmr.msra.gmra.mxu1 %v3498_v50  ;;  %v5193_v43 = vpop.f32.mrf.mxu0  ;;  %4767 = vmatprep.subr.bf16.mxu0 %v4860_v47 }
 0x21d   :  { %4788 = vmatpush3.bf16.msra.mxu1 %v4875_v1  ;;  %v3197_v55 = vadd.f32 %v5193_v43, %v550_v58  ;;  %v3236_v34 = vadd.f32 %v5191_v51, %v3195_v33 }
 0x21e   :  { %v5195_v57 = vpop.f32.mrf.mxu1  ;;  %v3198_v60 = vpop.f32.mrf.mxu0  ;;  %4789 = vmatprep.subr.bf16.mxu1 %v4876_v3 }
 0x21f   :  { %4768 = vmatpush3.bf16.msra.mxu0 %v4861_v15  ;;  %v3238_v39 = vadd.f32 %v5195_v57, %v3197_v55 }
 0x220   :  { %v3239_v61 = vpop.f32.mrf.mxu1  ;;  %v3199_v0 = vpop.f32.mrf.mxu0  ;;  %4769 = vmatprep.subr.bf16.mxu0 %v4862_v52 }
 0x221   :  { %4790 = vmatpush3.bf16.msra.mxu1 %v4877_v7  ;;  %v553_v61 = vsub.s32 6, %v5114_v56 }
 0x222   :  { %v3240_v6 = vpop.f32.mrf.mxu1  ;;  %4791 = vmatprep.subr.bf16.mxu1 %v4878_v9 }
 0x223   :  { %4770 = vmatpush3.bf16.msra.mxu0 %v4863_v62  ;;  %v557_v62 = vsub.s32 7, %v5114_v56 }
 0x224   :  { %4771 = vmatprep.subr.bf16.mxu0 %v4864_v63  ;;  %v554_v63 = vrot.slane %v5175_v37, %v553_v61 }
 0x225   :  { %4792 = vmatpush3.bf16.msra.mxu1 %v4879_v19  ;;  %v558_v0 = vrot.slane %v5175_v37, %v557_v62 }
 0x226   :  { %4793 = vmatprep.subr.bf16.mxu1 %v4880_v12 }
 0x227   :  { %4772 = vmatpush3.bf16.msra.mxu0 %v4865_v48 }
 0x228   :  { %4773 = vmatprep.subr.bf16.mxu0 %v4866_v54 }
 0x229   :  { %4794 = vmatpush3.bf16.msra.mxu1 %v4881_v14 }
 0x22a   :  { %4795 = vmatprep.subr.bf16.mxu1 %v4882_v17 }
 0x22b   :  { %4774 = vmatpush3.bf16.msra.mxu0 %v4867_v8 }
 0x22c   :  { %4775 = vmatprep.subr.bf16.mxu0 %v4868_v11 }
 0x22d   :  { %4796 = vmatpush3.bf16.msra.mxu1 %v4883_v24 }
 0x22e   :  { %4797 = vmatprep.subr.bf16.mxu1 %v4884_v18  ;;  %v4656_v18 = vld [vmem:[#allocation8] ss:$0 sm:$0xff] }
 0x22f   :  { %4776 = vmatpush3.bf16.msra.mxu0 %v4869_v13 }
 0x230   :  { %4777 = vmatprep.subr.bf16.mxu0 %v4870_v4 }
 0x231   :  { %4798 = vmatpush3.bf16.msra.mxu1 %v4885_v10 }
 0x232   :  { %4799 = vmatprep.subr.bf16.mxu1 %v4886_v35 }
 0x233   :  { %4778 = vmatpush3.bf16.msra.mxu0 %v4871_v36 }
 0x234   :  { %4779 = vmatprep.subr.bf16.mxu0 %v4872_v32 }
 0x235   :  { %4800 = vmatpush3.bf16.msra.mxu1 %v4887_v53 }
 0x236   :  { %4801 = vmatprep.subr.bf16.mxu1 %v4888_v49 }
 0x237   :  { %4780 = vmatpush3.bf16.msra.mxu0 %v4873_v25 }
 0x239   :  { %4802 = vmatpush3.bf16.msra.mxu1 %v4889_v27 }
 0x23c   :  { %v3317_v20 = vpop.f32.mrf.mxu1 }
 0x23e   :  { %v3319_v22 = vpop.f32.mrf.mxu1 }
 0x240   :  { %v3321_v23 = vpop.f32.mrf.mxu1 }
 0x242   :  { %v3322_v26 = vpop.f32.mrf.mxu1 }
 0x25a   :  { %v3276_v38 = vpop.f32.mrf.mxu0 }
 0x25b   :  { %v3277_v40 = vadd.f32 %v3276_v38, %v3236_v34 }
 0x25c   :  { %v3278_v41 = vpop.f32.mrf.mxu0 }
 0x25d   :  { %v3318_v59 = vadd.f32 %v3317_v20, %v3277_v40  ;;  %v3279_v42 = vadd.f32 %v3278_v41, %v3238_v39 }
 0x25e   :  { %v3280_v44 = vpop.f32.mrf.mxu0 }
 0x25f   :  { %v3320_v45 = vadd.f32 %v3319_v22, %v3279_v42  ;;  %v3492_v21 = vmax.f32 %v3318_v59, 0.0 }
 0x260   :  { %v3281_v2 = vpop.f32.mrf.mxu0 }
 0x261   :  { %v3493_v5 = vmax.f32 %v3320_v45, 0.0  ;;  %v3500_v47 = vpack.c.bf16 %v3492_v21, %v3492_v21 }
 0x263   :  { %v3501_v46 = vpack.c.bf16 %v3493_v5, %v3493_v5 }
 0x265   :  { %4135 = vmatprep.mubr.bf16.mxu0 %v3501_v46 }
 0x266   :  { %4136 = vmatmul.mubr.bf16.vlgmr.msra.gmra.mxu0 %v3500_v47 }
 0x27c   :  { %v3358_v50 = vpop.f32.mrf.mxu1 }
 0x27d   :  { %v3359_v31 = vadd.f32 %v3358_v50, %v554_v63 }
 0x27e   :  { %v3360_v16 = vpop.f32.mrf.mxu1 }
 0x27f   :  { %v3361_v1 = vadd.f32 %v3360_v16, %v558_v0 }
 0x280   :  { %v3362_v15 = vpop.f32.mrf.mxu1 }
 0x282   :  { %v3363_v51 = vpop.f32.mrf.mxu1 }
 0x29a   :  { %v3399_v43 = vpop.f32.mrf.mxu0 }
 0x29b   :  { %v3400_v3 = vadd.f32 %v3399_v43, %v3359_v31 }
 0x29c   :  { %v3401_v52 = vpop.f32.mrf.mxu0 }
 0x29d   :  { %v3402_v7 = vadd.f32 %v3401_v52, %v3361_v1 }
 0x29e   :  { %v3403_v57 = vpop.f32.mrf.mxu0 }
 0x2a0   :  { %v3404_v60 = vpop.f32.mrf.mxu0 }
 0x2ba   :  { %v3481_v6 = vpop.f32.mrf.mxu0 }
 0x2bc   :  { %v3440_v48 = vpop.f32.mrf.mxu1  ;;  %v3483_v9 = vpop.f32.mrf.mxu0 }
 0x2bd   :  { %v3441_v54 = vadd.f32 %v3440_v48, %v3400_v3 }
 0x2be   :  { %v3442_v8 = vpop.f32.mrf.mxu1  ;;  %v3485_v12 = vpop.f32.mrf.mxu0 }
 0x2bf   :  { %v3482_v19 = vadd.f32 %v3481_v6, %v3441_v54  ;;  %v3443_v11 = vadd.f32 %v3442_v8, %v3402_v7 }
 0x2c0   :  { %v3444_v13 = vpop.f32.mrf.mxu1  ;;  %v3486_v4 = vpop.f32.mrf.mxu0 }
 0x2c1   :  { %v3484_v14 = vadd.f32 %v3483_v9, %v3443_v11  ;;  %v3494_v56 = vmax.f32 %v3482_v19, 0.0 }
 0x2c2   :  { %v3445_v17 = vpop.f32.mrf.mxu1 }
 0x2c3   :  { %v3495_v36 = vmax.f32 %v3484_v14, 0.0  ;;  %v3502_v37 = vpack.c.bf16 %v3494_v56, %v3494_v56 }
 0x2c5   :  { %v3503_v24 = vpack.c.bf16 %v3495_v36, %v3495_v36 }
 0x2c7   :  { %4175 = vmatprep.mubr.bf16.mxu1 %v3503_v24 }
 0x2c8   :  { %4176 = vmatmul.mubr.bf16.vlgmr.msra.gmra.mxu1 %v3502_v37 }
 0x2da   :  { %v4737_v32 = vpop.f32.mrf.mxu0 }
 0x2dc   :  { %v4759_v25 = vpop.f32.mrf.mxu1  ;;  %v4738_v20 = vpop.f32.mrf.mxu0 }
 0x2dd   :  { %v4739_v10 = vadd.f32 %v4738_v20, %v4737_v32 }
 0x2de   :  { %v4760_v22 = vpop.f32.mrf.mxu1  ;;  %v4740_v23 = vpop.f32.mrf.mxu0 }
 0x2df   :  { %v4761_v35 = vadd.f32 %v4760_v22, %v4759_v25  ;;  %v4058_v53 = vadd.f32 %v4739_v10, %v4656_v18 }
 0x2e0   :  { %v4762_v26 = vpop.f32.mrf.mxu1  ;;  %v4741_v49 = vpop.f32.mrf.mxu0 }
 0x2e1   :  { %v4098_v27 = vadd.f32 %v4761_v35, %v4058_v53 }
 0x2e2   :  { %v4763_v28 = vpop.f32.mrf.mxu1 }
 0x326   :  { %v4781_v29 = vpop.f32.mrf.mxu0 }
 0x328   :  { %v4782_v30 = vpop.f32.mrf.mxu0 }
 0x329   :  { %v4783_v58 = vadd.f32 %v4782_v30, %v4781_v29 }
 0x32a   :  { %v4784_v33 = vpop.f32.mrf.mxu0 }
 0x32b   :  { %v4138_v55 = vadd.f32 %v4783_v58, %v4098_v27 }
 0x32c   :  { %v4785_v34 = vpop.f32.mrf.mxu0 }
 0x388   :  { %v4803_v38 = vpop.f32.mrf.mxu1 }
 0x38a   :  { %v4804_v39 = vpop.f32.mrf.mxu1 }
 0x38b   :  { %v4805_v40 = vadd.f32 %v4804_v39, %v4803_v38 }
 0x38c   :  { %v4806_v41 = vpop.f32.mrf.mxu1 }
 0x38d   :  { %v4178_v59 = vadd.f32 %v4805_v40, %v4138_v55 }
 0x38e   :  { %v4807_v42 = vpop.f32.mrf.mxu1 }
 0x38f   :  { %4183 = vst [vmem:[#allocation10] sm:$0xff] %v4178_v59 }
 0x390   :  { %4983 = shalt.err (!%p4980_p10)
}
 0x391   :  { %4193 = dma.vmem_to_hbm [thread:$0]  %s4191_s24, 128, %s5217_s5, [#allocation4]  }
 0x392   :  { %4998 = dma.done.wait [#allocation4], 128  }
 0x393   :  { %4999 = vsyncadd [#allocation4], 4294967168 }
 0x394   :  { %4197 = vsyncpa [#allocation3], 1 }
 0x395   :  { %4198 = vsyncpa [#allocation6], 1 }
 0x396   :  { %4199 = vsyncpa [#allocation9], 1 }
 0x397   :  { %4200 = vsyncpa [#allocation4], 1 }

</bundles_post_ra>
